<compile_context>
chip_gen: v7x
topology: tpu7x:2x2x1
jax: 0.10.0
libtpu: 0.0.40
codegen_flags: <defaults>
</compile_context>

<pallas_src>
import functools

import jax
import jax.numpy as jnp
from jax import lax
from jax.experimental import pallas as pl
from jax.experimental.pallas import tpu as pltpu


def _res_block_kernel(x_ref, w1_ref, w2_ref, mask_ref, out_ref, *, img_w, hw, R):
    """Fused ResBlock body for one packed batch block.

    Refs (all VMEM):
      x_ref   : (1, R, HW)   activations; R = nb*C rows (packed batch x channels),
                             HW = H*W lanes (lane-dense)
      w1_ref  : (10, R, R)   conv1 weights, block-diagonal over the nb packed images;
                             slice j = tap ky*3+kx for j<9, slice 9 = bias (col 0)
      w2_ref  : (10, R, R)   conv2 weights, same layout
      mask_ref: (9, R, HW)   0/1 f32 boundary masks per tap (precomputed, resident)
      out_ref : (1, R, HW)
    """
    x = x_ref[0].astype(jnp.float32)                      # (R, HW)
    w1 = w1_ref[...].astype(jnp.float32)
    w2 = w2_ref[...].astype(jnp.float32)
    ones = jnp.ones((R, hw), jnp.float32)                 # "activation" for the bias tap
    # Masks were built in the wrapper (no per-step iota/div/cmp); center tap (j=4)
    # never needs one.  Loaded once per grid step, shared by both convs.
    masks = {j: mask_ref[j] for j in range(9) if j != 4}

    def conv3x3(a, w):
        # a: (R, HW) f32, already ReLU'd.  w: (10, R, R) f32 (block-diagonal).
        # One small MXU contraction per tap; bias folded in via the ones tap.
        acc = jnp.dot(w[9], ones, preferred_element_type=jnp.float32,
                      precision=lax.Precision.HIGHEST)
        for ky in range(3):
            for kx in range(3):
                j = ky * 3 + kx
                off = (ky - 1) * img_w + (kx - 1)
                if off == 0:
                    tap = a
                else:
                    # shifted[p] = a[p + off]; wrapped / out-of-image lanes are zeroed
                    # by the mask (== the conv's zero padding).  XLU roll, VPU mul.
                    tap = pltpu.roll(a, (-off) % hw, axis=1) * masks[j]
                acc = acc + jnp.dot(w[j], tap, preferred_element_type=jnp.float32,
                                    precision=lax.Precision.HIGHEST)
        return acc                                          # (R, HW) f32

    r = conv3x3(jnp.maximum(x, 0.0), w1)                    # conv1(relu(x))
    r = conv3x3(jnp.maximum(r, 0.0), w2)                    # conv2(relu(r))
    out_ref[0] = (x + r).astype(out_ref.dtype)              # residual add


def _pick_batch_pack(n, c):
    """How many batch elements to pack onto sublanes per grid step.

    Fill the 8 f32 sublanes (nb*C -> 8) to cut grid-step count on single-TC
    v5e/v6e, but never collapse below 2 grid steps so both of v7x's
    TensorCores stay busy via the "parallel" batch axis.
    """
    cap = max(1, 8 // max(c, 1))
    best = 1
    for cand in range(1, min(cap, n) + 1):
        if n % cand == 0 and (n // cand >= 2 or n == 1):
            best = cand
    return best


def _prep_weight(w_hwio, b, c, nb):
    """HWIO (3,3,c,c) + bias (c,) -> (10, nb*c, nb*c) block-diagonal tap weights.

    Slice j (= ky*3+kx) holds w[j, co, ci] = w_hwio[ky, kx, ci, co]; slice 9
    holds the bias in column 0 of each diagonal block (contracted against a
    ones tap inside the kernel).
    """
    wt = jnp.transpose(w_hwio, (0, 1, 3, 2)).reshape(9, c, c)
    bias_tap = jnp.zeros((1, c, c), wt.dtype).at[0, :, 0].set(b.astype(wt.dtype))
    w10 = jnp.concatenate([wt, bias_tap], axis=0)           # (10, c, c)
    if nb > 1:
        eye = jnp.eye(nb, dtype=w10.dtype)
        w10 = jnp.einsum("jab,nm->jnamb", w10, eye).reshape(10, nb * c, nb * c)
    return w10.astype(jnp.float32)


def _make_masks(h, w, rows):
    """(9, rows, H*W) 0/1 f32 boundary-validity masks for the 9 taps."""
    hw = h * w
    pos = jnp.arange(hw, dtype=jnp.int32)
    hh = pos // w
    ww = pos % w
    masks = []
    for ky in range(3):
        for kx in range(3):
            dy, dx = ky - 1, kx - 1
            m = jnp.ones((hw,), jnp.bool_)
            if dy < 0:
                m = m & (hh >= -dy)
            if dy > 0:
                m = m & (hh < h - dy)
            if dx < 0:
                m = m & (ww >= -dx)
            if dx > 0:
                m = m & (ww < w - dx)
            masks.append(m)
    mask = jnp.stack(masks, axis=0).astype(jnp.float32)      # (9, HW)
    return jnp.broadcast_to(mask[:, None, :], (9, rows, hw))


def res_block_forward(x, params):
    """ResBlock forward.  x: (N, C, H, W) NCHW; weights HWIO (3,3,Cin,Cout)."""
    N, C, H, W = x.shape
    w1, b1, w2, b2 = params["w1"], params["b1"], params["w2"], params["b2"]
    Cout = w1.shape[-1]
    assert w1.shape == (3, 3, C, Cout) and w2.shape == (3, 3, Cout, Cout)
    # Only the identity-skip path (indim == outdim, stride == 1) is implemented.
    assert C == Cout, "downsample branch not implemented"

    HW = H * W
    nb = _pick_batch_pack(N, C)          # batch elements packed per grid step
    G = N // nb                          # grid steps
    R = nb * C                           # rows per block (sublane occupancy)

    x_flat = x.reshape(G, R, HW)         # free contiguous view of NCHW
    w1_t = _prep_weight(w1, b1, C, nb)   # (10, R, R)
    w2_t = _prep_weight(w2, b2, C, nb)   # (10, R, R)
    mask = _make_masks(H, W, R)          # (9, R, HW), resident across grid steps

    kernel = functools.partial(_res_block_kernel, img_w=W, hw=HW, R=R)

    out = pl.pallas_call(
        kernel,
        out_shape=jax.ShapeDtypeStruct((G, R, HW), x.dtype),
        grid=(G,),
        in_specs=[
            pl.BlockSpec((1, R, HW), lambda n: (n, 0, 0)),
            pl.BlockSpec((10, R, R), lambda n: (0, 0, 0)),
            pl.BlockSpec((10, R, R), lambda n: (0, 0, 0)),
            pl.BlockSpec((9, R, HW), lambda n: (0, 0, 0)),
        ],
        out_specs=pl.BlockSpec((1, R, HW), lambda n: (n, 0, 0)),
        compiler_params=pltpu.CompilerParams(
            dimension_semantics=("parallel",)),
    )(x_flat, w1_t, w2_t, mask)
    return out.reshape(N, Cout, H, W)


def res_block_reference(x, p):
    """Plain-JAX reference (NCHW / HWIO) for validation."""
    def conv(y, w, b):
        out = jax.lax.conv_general_dilated(
            y, w, window_strides=(1, 1), padding=((1, 1), (1, 1)),
            dimension_numbers=("NCHW", "HWIO", "NCHW"),
            precision=lax.Precision.HIGHEST)
        return out + b[None, :, None, None]
    r = conv(jax.nn.relu(x), p["w1"], p["b1"])
    r = conv(jax.nn.relu(r), p["w2"], p["b2"])
    return x + r


def init_params(key, indim, outdim):
    k1, k2, k3, k4 = jax.random.split(key, 4)
    fan1 = indim * 9
    fan2 = outdim * 9
    return {
        "w1": jax.random.normal(k1, (3, 3, indim, outdim), jnp.float32)
              / jnp.sqrt(fan1),
        "b1": jax.random.normal(k2, (outdim,), jnp.float32) * 0.01,
        "w2": jax.random.normal(k3, (3, 3, outdim, outdim), jnp.float32)
              / jnp.sqrt(fan2),
        "b2": jax.random.normal(k4, (outdim,), jnp.float32) * 0.01,
    }


if __name__ == "__main__":
    key = jax.random.PRNGKey(0)
    kx, kp, kx2 = jax.random.split(key, 3)

    N, C, H, W = 2, 4, 16, 16                  # PyTorch NCHW shape (2, 4, 16, 16)
    x = jax.random.normal(kx, (N, C, H, W), jnp.float32)
    params = init_params(kp, indim=C, outdim=C)

    out = jax.jit(res_block_forward)(x, params)
    out = jax.block_until_ready(out)
    ref = res_block_reference(x, params)
    assert out.shape == (N, C, H, W)
    assert jnp.allclose(out, ref, atol=1e-4, rtol=1e-4), "mismatch vs reference (N=2)"

    # Also exercise the sublane batch-packing path (N=4 -> nb=2, full 8-row tiles,
    # still 2 "parallel" grid steps for v7x's two TensorCores).
    x4 = jax.random.normal(kx2, (4, C, H, W), jnp.float32)
    out4 = jax.block_until_ready(jax.jit(res_block_forward)(x4, params))
    ref4 = res_block_reference(x4, params)
    assert jnp.allclose(out4, ref4, atol=1e-4, rtol=1e-4), "mismatch vs reference (N=4)"

    print("KERNEL_OK")
</pallas_src>

<mosaic_0001>
module attributes {stable_mosaic.version = 11 : i64} {
  func.func @_res_block_kernel(%arg0: i32, %arg1: memref<1x4x256xf32, #tpu.memory_space<vmem>>, %arg2: memref<10x4x4xf32, #tpu.memory_space<vmem>>, %arg3: memref<10x4x4xf32, #tpu.memory_space<vmem>>, %arg4: memref<9x4x256xf32, #tpu.memory_space<vmem>>, %arg5: memref<1x4x256xf32, #tpu.memory_space<vmem>>) attributes {dimension_semantics = [#tpu.dimension_semantics<parallel>], iteration_bounds = array<i64: 2>, scalar_prefetch = 0 : i64, scratch_operands = 0 : i64, tpu.core_type = #tpu.core_type<tc>, window_params = [{transform_indices = @transform_0, window_bounds = array<i64: 1, 4, 256>}, {pipeline_mode = #tpu.pipeline_mode<synchronous>, transform_indices = @transform_1, window_bounds = array<i64: 10, 4, 4>}, {pipeline_mode = #tpu.pipeline_mode<synchronous>, transform_indices = @transform_2, window_bounds = array<i64: 10, 4, 4>}, {pipeline_mode = #tpu.pipeline_mode<synchronous>, transform_indices = @transform_3, window_bounds = array<i64: 9, 4, 256>}, {transform_indices = @transform_4, window_bounds = array<i64: 1, 4, 256>}]} {
    %c0 = arith.constant 0 : index
    %c0_0 = arith.constant 0 : index
    %c0_1 = arith.constant 0 : index
    %0 = vector.load %arg1[%c0, %c0_0, %c0_1] : memref<1x4x256xf32, #tpu.memory_space<vmem>>, vector<1x4x256xf32>
    %1 = vector.shape_cast %0 : vector<1x4x256xf32> to vector<4x256xf32>
    %c0_2 = arith.constant 0 : index
    %c0_3 = arith.constant 0 : index
    %c0_4 = arith.constant 0 : index
    %2 = vector.load %arg2[%c0_2, %c0_3, %c0_4] : memref<10x4x4xf32, #tpu.memory_space<vmem>>, vector<10x4x4xf32>
    %c0_5 = arith.constant 0 : index
    %c0_6 = arith.constant 0 : index
    %c0_7 = arith.constant 0 : index
    %3 = vector.load %arg3[%c0_5, %c0_6, %c0_7] : memref<10x4x4xf32, #tpu.memory_space<vmem>>, vector<10x4x4xf32>
    %cst = arith.constant 1.000000e+00 : f32
    %4 = vector.broadcast %cst : f32 to vector<4x256xf32>
    %c0_8 = arith.constant 0 : index
    %c0_9 = arith.constant 0 : index
    %c0_10 = arith.constant 0 : index
    %5 = vector.load %arg4[%c0_8, %c0_9, %c0_10] : memref<9x4x256xf32, #tpu.memory_space<vmem>>, vector<1x4x256xf32>
    %6 = vector.shape_cast %5 : vector<1x4x256xf32> to vector<4x256xf32>
    %c1 = arith.constant 1 : index
    %c0_11 = arith.constant 0 : index
    %c0_12 = arith.constant 0 : index
    %7 = vector.load %arg4[%c1, %c0_11, %c0_12] : memref<9x4x256xf32, #tpu.memory_space<vmem>>, vector<1x4x256xf32>
    %8 = vector.shape_cast %7 : vector<1x4x256xf32> to vector<4x256xf32>
    %c2 = arith.constant 2 : index
    %c0_13 = arith.constant 0 : index
    %c0_14 = arith.constant 0 : index
    %9 = vector.load %arg4[%c2, %c0_13, %c0_14] : memref<9x4x256xf32, #tpu.memory_space<vmem>>, vector<1x4x256xf32>
    %10 = vector.shape_cast %9 : vector<1x4x256xf32> to vector<4x256xf32>
    %c3 = arith.constant 3 : index
    %c0_15 = arith.constant 0 : index
    %c0_16 = arith.constant 0 : index
    %11 = vector.load %arg4[%c3, %c0_15, %c0_16] : memref<9x4x256xf32, #tpu.memory_space<vmem>>, vector<1x4x256xf32>
    %12 = vector.shape_cast %11 : vector<1x4x256xf32> to vector<4x256xf32>
    %c5 = arith.constant 5 : index
    %c0_17 = arith.constant 0 : index
    %c0_18 = arith.constant 0 : index
    %13 = vector.load %arg4[%c5, %c0_17, %c0_18] : memref<9x4x256xf32, #tpu.memory_space<vmem>>, vector<1x4x256xf32>
    %14 = vector.shape_cast %13 : vector<1x4x256xf32> to vector<4x256xf32>
    %c6 = arith.constant 6 : index
    %c0_19 = arith.constant 0 : index
    %c0_20 = arith.constant 0 : index
    %15 = vector.load %arg4[%c6, %c0_19, %c0_20] : memref<9x4x256xf32, #tpu.memory_space<vmem>>, vector<1x4x256xf32>
    %16 = vector.shape_cast %15 : vector<1x4x256xf32> to vector<4x256xf32>
    %c7 = arith.constant 7 : index
    %c0_21 = arith.constant 0 : index
    %c0_22 = arith.constant 0 : index
    %17 = vector.load %arg4[%c7, %c0_21, %c0_22] : memref<9x4x256xf32, #tpu.memory_space<vmem>>, vector<1x4x256xf32>
    %18 = vector.shape_cast %17 : vector<1x4x256xf32> to vector<4x256xf32>
    %c8 = arith.constant 8 : index
    %c0_23 = arith.constant 0 : index
    %c0_24 = arith.constant 0 : index
    %19 = vector.load %arg4[%c8, %c0_23, %c0_24] : memref<9x4x256xf32, #tpu.memory_space<vmem>>, vector<1x4x256xf32>
    %20 = vector.shape_cast %19 : vector<1x4x256xf32> to vector<4x256xf32>
    %cst_25 = arith.constant 0.000000e+00 : f32
    %21 = vector.broadcast %cst_25 : f32 to vector<4x256xf32>
    %22 = arith.maximumf %1, %21 : vector<4x256xf32>
    %23 = vector.extract_strided_slice %2 {offsets = [9, 0, 0], sizes = [1, 4, 4], strides = [1, 1, 1]} : vector<10x4x4xf32> to vector<1x4x4xf32>
    %24 = vector.shape_cast %23 : vector<1x4x4xf32> to vector<4x4xf32>
    %cst_26 = arith.constant dense<0.000000e+00> : vector<4x256xf32>
    %25 = tpu.matmul %24, %4, %cst_26 {dimension_numbers = #tpu.dot_dimension_numbers<[1], [0], [0], [1], [0, 0, 1, 1], [], []>, precision = #tpu.contract_precision<fp32>} : vector<4x4xf32>, vector<4x256xf32>, vector<4x256xf32> -> vector<4x256xf32>
    %c17_i32 = arith.constant 17 : i32
    %26 = tpu.dynamic_rotate %22 by %c17_i32 dim 1 : vector<4x256xf32>, i32 -> vector<4x256xf32>
    %27 = arith.mulf %26, %6 : vector<4x256xf32>
    %28 = vector.extract_strided_slice %2 {offsets = [0, 0, 0], sizes = [1, 4, 4], strides = [1, 1, 1]} : vector<10x4x4xf32> to vector<1x4x4xf32>
    %29 = vector.shape_cast %28 : vector<1x4x4xf32> to vector<4x4xf32>
    %cst_27 = arith.constant dense<0.000000e+00> : vector<4x256xf32>
    %30 = tpu.matmul %29, %27, %cst_27 {dimension_numbers = #tpu.dot_dimension_numbers<[1], [0], [0], [1], [0, 0, 1, 1], [], []>, precision = #tpu.contract_precision<fp32>} : vector<4x4xf32>, vector<4x256xf32>, vector<4x256xf32> -> vector<4x256xf32>
    %31 = arith.addf %25, %30 : vector<4x256xf32>
    %c16_i32 = arith.constant 16 : i32
    %32 = tpu.dynamic_rotate %22 by %c16_i32 dim 1 : vector<4x256xf32>, i32 -> vector<4x256xf32>
    %33 = arith.mulf %32, %8 : vector<4x256xf32>
    %34 = vector.extract_strided_slice %2 {offsets = [1, 0, 0], sizes = [1, 4, 4], strides = [1, 1, 1]} : vector<10x4x4xf32> to vector<1x4x4xf32>
    %35 = vector.shape_cast %34 : vector<1x4x4xf32> to vector<4x4xf32>
    %cst_28 = arith.constant dense<0.000000e+00> : vector<4x256xf32>
    %36 = tpu.matmul %35, %33, %cst_28 {dimension_numbers = #tpu.dot_dimension_numbers<[1], [0], [0], [1], [0, 0, 1, 1], [], []>, precision = #tpu.contract_precision<fp32>} : vector<4x4xf32>, vector<4x256xf32>, vector<4x256xf32> -> vector<4x256xf32>
    %37 = arith.addf %31, %36 : vector<4x256xf32>
    %c15_i32 = arith.constant 15 : i32
    %38 = tpu.dynamic_rotate %22 by %c15_i32 dim 1 : vector<4x256xf32>, i32 -> vector<4x256xf32>
    %39 = arith.mulf %38, %10 : vector<4x256xf32>
    %40 = vector.extract_strided_slice %2 {offsets = [2, 0, 0], sizes = [1, 4, 4], strides = [1, 1, 1]} : vector<10x4x4xf32> to vector<1x4x4xf32>
    %41 = vector.shape_cast %40 : vector<1x4x4xf32> to vector<4x4xf32>
    %cst_29 = arith.constant dense<0.000000e+00> : vector<4x256xf32>
    %42 = tpu.matmul %41, %39, %cst_29 {dimension_numbers = #tpu.dot_dimension_numbers<[1], [0], [0], [1], [0, 0, 1, 1], [], []>, precision = #tpu.contract_precision<fp32>} : vector<4x4xf32>, vector<4x256xf32>, vector<4x256xf32> -> vector<4x256xf32>
    %43 = arith.addf %37, %42 : vector<4x256xf32>
    %c1_i32 = arith.constant 1 : i32
    %44 = tpu.dynamic_rotate %22 by %c1_i32 dim 1 : vector<4x256xf32>, i32 -> vector<4x256xf32>
    %45 = arith.mulf %44, %12 : vector<4x256xf32>
    %46 = vector.extract_strided_slice %2 {offsets = [3, 0, 0], sizes = [1, 4, 4], strides = [1, 1, 1]} : vector<10x4x4xf32> to vector<1x4x4xf32>
    %47 = vector.shape_cast %46 : vector<1x4x4xf32> to vector<4x4xf32>
    %cst_30 = arith.constant dense<0.000000e+00> : vector<4x256xf32>
    %48 = tpu.matmul %47, %45, %cst_30 {dimension_numbers = #tpu.dot_dimension_numbers<[1], [0], [0], [1], [0, 0, 1, 1], [], []>, precision = #tpu.contract_precision<fp32>} : vector<4x4xf32>, vector<4x256xf32>, vector<4x256xf32> -> vector<4x256xf32>
    %49 = arith.addf %43, %48 : vector<4x256xf32>
    %50 = vector.extract_strided_slice %2 {offsets = [4, 0, 0], sizes = [1, 4, 4], strides = [1, 1, 1]} : vector<10x4x4xf32> to vector<1x4x4xf32>
    %51 = vector.shape_cast %50 : vector<1x4x4xf32> to vector<4x4xf32>
    %cst_31 = arith.constant dense<0.000000e+00> : vector<4x256xf32>
    %52 = tpu.matmul %51, %22, %cst_31 {dimension_numbers = #tpu.dot_dimension_numbers<[1], [0], [0], [1], [0, 0, 1, 1], [], []>, precision = #tpu.contract_precision<fp32>} : vector<4x4xf32>, vector<4x256xf32>, vector<4x256xf32> -> vector<4x256xf32>
    %53 = arith.addf %49, %52 : vector<4x256xf32>
    %c255_i32 = arith.constant 255 : i32
    %54 = tpu.dynamic_rotate %22 by %c255_i32 dim 1 : vector<4x256xf32>, i32 -> vector<4x256xf32>
    %55 = arith.mulf %54, %14 : vector<4x256xf32>
    %56 = vector.extract_strided_slice %2 {offsets = [5, 0, 0], sizes = [1, 4, 4], strides = [1, 1, 1]} : vector<10x4x4xf32> to vector<1x4x4xf32>
    %57 = vector.shape_cast %56 : vector<1x4x4xf32> to vector<4x4xf32>
    %cst_32 = arith.constant dense<0.000000e+00> : vector<4x256xf32>
    %58 = tpu.matmul %57, %55, %cst_32 {dimension_numbers = #tpu.dot_dimension_numbers<[1], [0], [0], [1], [0, 0, 1, 1], [], []>, precision = #tpu.contract_precision<fp32>} : vector<4x4xf32>, vector<4x256xf32>, vector<4x256xf32> -> vector<4x256xf32>
    %59 = arith.addf %53, %58 : vector<4x256xf32>
    %c241_i32 = arith.constant 241 : i32
    %60 = tpu.dynamic_rotate %22 by %c241_i32 dim 1 : vector<4x256xf32>, i32 -> vector<4x256xf32>
    %61 = arith.mulf %60, %16 : vector<4x256xf32>
    %62 = vector.extract_strided_slice %2 {offsets = [6, 0, 0], sizes = [1, 4, 4], strides = [1, 1, 1]} : vector<10x4x4xf32> to vector<1x4x4xf32>
    %63 = vector.shape_cast %62 : vector<1x4x4xf32> to vector<4x4xf32>
    %cst_33 = arith.constant dense<0.000000e+00> : vector<4x256xf32>
    %64 = tpu.matmul %63, %61, %cst_33 {dimension_numbers = #tpu.dot_dimension_numbers<[1], [0], [0], [1], [0, 0, 1, 1], [], []>, precision = #tpu.contract_precision<fp32>} : vector<4x4xf32>, vector<4x256xf32>, vector<4x256xf32> -> vector<4x256xf32>
    %65 = arith.addf %59, %64 : vector<4x256xf32>
    %c240_i32 = arith.constant 240 : i32
    %66 = tpu.dynamic_rotate %22 by %c240_i32 dim 1 : vector<4x256xf32>, i32 -> vector<4x256xf32>
    %67 = arith.mulf %66, %18 : vector<4x256xf32>
    %68 = vector.extract_strided_slice %2 {offsets = [7, 0, 0], sizes = [1, 4, 4], strides = [1, 1, 1]} : vector<10x4x4xf32> to vector<1x4x4xf32>
    %69 = vector.shape_cast %68 : vector<1x4x4xf32> to vector<4x4xf32>
    %cst_34 = arith.constant dense<0.000000e+00> : vector<4x256xf32>
    %70 = tpu.matmul %69, %67, %cst_34 {dimension_numbers = #tpu.dot_dimension_numbers<[1], [0], [0], [1], [0, 0, 1, 1], [], []>, precision = #tpu.contract_precision<fp32>} : vector<4x4xf32>, vector<4x256xf32>, vector<4x256xf32> -> vector<4x256xf32>
    %71 = arith.addf %65, %70 : vector<4x256xf32>
    %c239_i32 = arith.constant 239 : i32
    %72 = tpu.dynamic_rotate %22 by %c239_i32 dim 1 : vector<4x256xf32>, i32 -> vector<4x256xf32>
    %73 = arith.mulf %72, %20 : vector<4x256xf32>
    %74 = vector.extract_strided_slice %2 {offsets = [8, 0, 0], sizes = [1, 4, 4], strides = [1, 1, 1]} : vector<10x4x4xf32> to vector<1x4x4xf32>
    %75 = vector.shape_cast %74 : vector<1x4x4xf32> to vector<4x4xf32>
    %cst_35 = arith.constant dense<0.000000e+00> : vector<4x256xf32>
    %76 = tpu.matmul %75, %73, %cst_35 {dimension_numbers = #tpu.dot_dimension_numbers<[1], [0], [0], [1], [0, 0, 1, 1], [], []>, precision = #tpu.contract_precision<fp32>} : vector<4x4xf32>, vector<4x256xf32>, vector<4x256xf32> -> vector<4x256xf32>
    %77 = arith.addf %71, %76 : vector<4x256xf32>
    %cst_36 = arith.constant 0.000000e+00 : f32
    %78 = vector.broadcast %cst_36 : f32 to vector<4x256xf32>
    %79 = arith.maximumf %77, %78 : vector<4x256xf32>
    %80 = vector.extract_strided_slice %3 {offsets = [9, 0, 0], sizes = [1, 4, 4], strides = [1, 1, 1]} : vector<10x4x4xf32> to vector<1x4x4xf32>
    %81 = vector.shape_cast %80 : vector<1x4x4xf32> to vector<4x4xf32>
    %cst_37 = arith.constant dense<0.000000e+00> : vector<4x256xf32>
    %82 = tpu.matmul %81, %4, %cst_37 {dimension_numbers = #tpu.dot_dimension_numbers<[1], [0], [0], [1], [0, 0, 1, 1], [], []>, precision = #tpu.contract_precision<fp32>} : vector<4x4xf32>, vector<4x256xf32>, vector<4x256xf32> -> vector<4x256xf32>
    %c17_i32_38 = arith.constant 17 : i32
    %83 = tpu.dynamic_rotate %79 by %c17_i32_38 dim 1 : vector<4x256xf32>, i32 -> vector<4x256xf32>
    %84 = arith.mulf %83, %6 : vector<4x256xf32>
    %85 = vector.extract_strided_slice %3 {offsets = [0, 0, 0], sizes = [1, 4, 4], strides = [1, 1, 1]} : vector<10x4x4xf32> to vector<1x4x4xf32>
    %86 = vector.shape_cast %85 : vector<1x4x4xf32> to vector<4x4xf32>
    %cst_39 = arith.constant dense<0.000000e+00> : vector<4x256xf32>
    %87 = tpu.matmul %86, %84, %cst_39 {dimension_numbers = #tpu.dot_dimension_numbers<[1], [0], [0], [1], [0, 0, 1, 1], [], []>, precision = #tpu.contract_precision<fp32>} : vector<4x4xf32>, vector<4x256xf32>, vector<4x256xf32> -> vector<4x256xf32>
    %88 = arith.addf %82, %87 : vector<4x256xf32>
    %c16_i32_40 = arith.constant 16 : i32
    %89 = tpu.dynamic_rotate %79 by %c16_i32_40 dim 1 : vector<4x256xf32>, i32 -> vector<4x256xf32>
    %90 = arith.mulf %89, %8 : vector<4x256xf32>
    %91 = vector.extract_strided_slice %3 {offsets = [1, 0, 0], sizes = [1, 4, 4], strides = [1, 1, 1]} : vector<10x4x4xf32> to vector<1x4x4xf32>
    %92 = vector.shape_cast %91 : vector<1x4x4xf32> to vector<4x4xf32>
    %cst_41 = arith.constant dense<0.000000e+00> : vector<4x256xf32>
    %93 = tpu.matmul %92, %90, %cst_41 {dimension_numbers = #tpu.dot_dimension_numbers<[1], [0], [0], [1], [0, 0, 1, 1], [], []>, precision = #tpu.contract_precision<fp32>} : vector<4x4xf32>, vector<4x256xf32>, vector<4x256xf32> -> vector<4x256xf32>
    %94 = arith.addf %88, %93 : vector<4x256xf32>
    %c15_i32_42 = arith.constant 15 : i32
    %95 = tpu.dynamic_rotate %79 by %c15_i32_42 dim 1 : vector<4x256xf32>, i32 -> vector<4x256xf32>
    %96 = arith.mulf %95, %10 : vector<4x256xf32>
    %97 = vector.extract_strided_slice %3 {offsets = [2, 0, 0], sizes = [1, 4, 4], strides = [1, 1, 1]} : vector<10x4x4xf32> to vector<1x4x4xf32>
    %98 = vector.shape_cast %97 : vector<1x4x4xf32> to vector<4x4xf32>
    %cst_43 = arith.constant dense<0.000000e+00> : vector<4x256xf32>
    %99 = tpu.matmul %98, %96, %cst_43 {dimension_numbers = #tpu.dot_dimension_numbers<[1], [0], [0], [1], [0, 0, 1, 1], [], []>, precision = #tpu.contract_precision<fp32>} : vector<4x4xf32>, vector<4x256xf32>, vector<4x256xf32> -> vector<4x256xf32>
    %100 = arith.addf %94, %99 : vector<4x256xf32>
    %c1_i32_44 = arith.constant 1 : i32
    %101 = tpu.dynamic_rotate %79 by %c1_i32_44 dim 1 : vector<4x256xf32>, i32 -> vector<4x256xf32>
    %102 = arith.mulf %101, %12 : vector<4x256xf32>
    %103 = vector.extract_strided_slice %3 {offsets = [3, 0, 0], sizes = [1, 4, 4], strides = [1, 1, 1]} : vector<10x4x4xf32> to vector<1x4x4xf32>
    %104 = vector.shape_cast %103 : vector<1x4x4xf32> to vector<4x4xf32>
    %cst_45 = arith.constant dense<0.000000e+00> : vector<4x256xf32>
    %105 = tpu.matmul %104, %102, %cst_45 {dimension_numbers = #tpu.dot_dimension_numbers<[1], [0], [0], [1], [0, 0, 1, 1], [], []>, precision = #tpu.contract_precision<fp32>} : vector<4x4xf32>, vector<4x256xf32>, vector<4x256xf32> -> vector<4x256xf32>
    %106 = arith.addf %100, %105 : vector<4x256xf32>
    %107 = vector.extract_strided_slice %3 {offsets = [4, 0, 0], sizes = [1, 4, 4], strides = [1, 1, 1]} : vector<10x4x4xf32> to vector<1x4x4xf32>
    %108 = vector.shape_cast %107 : vector<1x4x4xf32> to vector<4x4xf32>
    %cst_46 = arith.constant dense<0.000000e+00> : vector<4x256xf32>
    %109 = tpu.matmul %108, %79, %cst_46 {dimension_numbers = #tpu.dot_dimension_numbers<[1], [0], [0], [1], [0, 0, 1, 1], [], []>, precision = #tpu.contract_precision<fp32>} : vector<4x4xf32>, vector<4x256xf32>, vector<4x256xf32> -> vector<4x256xf32>
    %110 = arith.addf %106, %109 : vector<4x256xf32>
    %c255_i32_47 = arith.constant 255 : i32
    %111 = tpu.dynamic_rotate %79 by %c255_i32_47 dim 1 : vector<4x256xf32>, i32 -> vector<4x256xf32>
    %112 = arith.mulf %111, %14 : vector<4x256xf32>
    %113 = vector.extract_strided_slice %3 {offsets = [5, 0, 0], sizes = [1, 4, 4], strides = [1, 1, 1]} : vector<10x4x4xf32> to vector<1x4x4xf32>
    %114 = vector.shape_cast %113 : vector<1x4x4xf32> to vector<4x4xf32>
    %cst_48 = arith.constant dense<0.000000e+00> : vector<4x256xf32>
    %115 = tpu.matmul %114, %112, %cst_48 {dimension_numbers = #tpu.dot_dimension_numbers<[1], [0], [0], [1], [0, 0, 1, 1], [], []>, precision = #tpu.contract_precision<fp32>} : vector<4x4xf32>, vector<4x256xf32>, vector<4x256xf32> -> vector<4x256xf32>
    %116 = arith.addf %110, %115 : vector<4x256xf32>
    %c241_i32_49 = arith.constant 241 : i32
    %117 = tpu.dynamic_rotate %79 by %c241_i32_49 dim 1 : vector<4x256xf32>, i32 -> vector<4x256xf32>
    %118 = arith.mulf %117, %16 : vector<4x256xf32>
    %119 = vector.extract_strided_slice %3 {offsets = [6, 0, 0], sizes = [1, 4, 4], strides = [1, 1, 1]} : vector<10x4x4xf32> to vector<1x4x4xf32>
    %120 = vector.shape_cast %119 : vector<1x4x4xf32> to vector<4x4xf32>
    %cst_50 = arith.constant dense<0.000000e+00> : vector<4x256xf32>
    %121 = tpu.matmul %120, %118, %cst_50 {dimension_numbers = #tpu.dot_dimension_numbers<[1], [0], [0], [1], [0, 0, 1, 1], [], []>, precision = #tpu.contract_precision<fp32>} : vector<4x4xf32>, vector<4x256xf32>, vector<4x256xf32> -> vector<4x256xf32>
    %122 = arith.addf %116, %121 : vector<4x256xf32>
    %c240_i32_51 = arith.constant 240 : i32
    %123 = tpu.dynamic_rotate %79 by %c240_i32_51 dim 1 : vector<4x256xf32>, i32 -> vector<4x256xf32>
    %124 = arith.mulf %123, %18 : vector<4x256xf32>
    %125 = vector.extract_strided_slice %3 {offsets = [7, 0, 0], sizes = [1, 4, 4], strides = [1, 1, 1]} : vector<10x4x4xf32> to vector<1x4x4xf32>
    %126 = vector.shape_cast %125 : vector<1x4x4xf32> to vector<4x4xf32>
    %cst_52 = arith.constant dense<0.000000e+00> : vector<4x256xf32>
    %127 = tpu.matmul %126, %124, %cst_52 {dimension_numbers = #tpu.dot_dimension_numbers<[1], [0], [0], [1], [0, 0, 1, 1], [], []>, precision = #tpu.contract_precision<fp32>} : vector<4x4xf32>, vector<4x256xf32>, vector<4x256xf32> -> vector<4x256xf32>
    %128 = arith.addf %122, %127 : vector<4x256xf32>
    %c239_i32_53 = arith.constant 239 : i32
    %129 = tpu.dynamic_rotate %79 by %c239_i32_53 dim 1 : vector<4x256xf32>, i32 -> vector<4x256xf32>
    %130 = arith.mulf %129, %20 : vector<4x256xf32>
    %131 = vector.extract_strided_slice %3 {offsets = [8, 0, 0], sizes = [1, 4, 4], strides = [1, 1, 1]} : vector<10x4x4xf32> to vector<1x4x4xf32>
    %132 = vector.shape_cast %131 : vector<1x4x4xf32> to vector<4x4xf32>
    %cst_54 = arith.constant dense<0.000000e+00> : vector<4x256xf32>
    %133 = tpu.matmul %132, %130, %cst_54 {dimension_numbers = #tpu.dot_dimension_numbers<[1], [0], [0], [1], [0, 0, 1, 1], [], []>, precision = #tpu.contract_precision<fp32>} : vector<4x4xf32>, vector<4x256xf32>, vector<4x256xf32> -> vector<4x256xf32>
    %134 = arith.addf %128, %133 : vector<4x256xf32>
    %135 = arith.addf %1, %134 : vector<4x256xf32>
    %c0_55 = arith.constant 0 : index
    %c0_56 = arith.constant 0 : index
    %c0_57 = arith.constant 0 : index
    %136 = vector.load %arg5[%c0_55, %c0_56, %c0_57] : memref<1x4x256xf32, #tpu.memory_space<vmem>>, vector<1x4x256xf32>
    %137 = vector.shape_cast %136 : vector<1x4x256xf32> to vector<4x256xf32>
    %138 = vector.shape_cast %135 : vector<4x256xf32> to vector<1x4x256xf32>
    tpu.vector_store %arg5[%c0_55, %c0_56, %c0_57], %138 {strides = array<i32>} : memref<1x4x256xf32, #tpu.memory_space<vmem>>, vector<1x4x256xf32>,
    return
  }
  func.func @transform_0(%arg0: i32) -> (i32, i32, i32) {
    %c0_i32 = arith.constant 0 : i32
    %c0_i32_0 = arith.constant 0 : i32
    %c0_i32_1 = arith.constant 0 : i32
    return %arg0, %c0_i32, %c0_i32_0 : i32, i32, i32
  }
  func.func @transform_1(%arg0: i32) -> (i32, i32, i32) {
    %c0_i32 = arith.constant 0 : i32
    %c0_i32_0 = arith.constant 0 : i32
    %c0_i32_1 = arith.constant 0 : i32
    %c0_i32_2 = arith.constant 0 : i32
    return %c0_i32, %c0_i32_0, %c0_i32_1 : i32, i32, i32
  }
  func.func @transform_2(%arg0: i32) -> (i32, i32, i32) {
    %c0_i32 = arith.constant 0 : i32
    %c0_i32_0 = arith.constant 0 : i32
    %c0_i32_1 = arith.constant 0 : i32
    %c0_i32_2 = arith.constant 0 : i32
    return %c0_i32, %c0_i32_0, %c0_i32_1 : i32, i32, i32
  }
  func.func @transform_3(%arg0: i32) -> (i32, i32, i32) {
    %c0_i32 = arith.constant 0 : i32
    %c0_i32_0 = arith.constant 0 : i32
    %c0_i32_1 = arith.constant 0 : i32
    %c0_i32_2 = arith.constant 0 : i32
    return %c0_i32, %c0_i32_0, %c0_i32_1 : i32, i32, i32
  }
  func.func @transform_4(%arg0: i32) -> (i32, i32, i32) {
    %c0_i32 = arith.constant 0 : i32
    %c0_i32_0 = arith.constant 0 : i32
    %c0_i32_1 = arith.constant 0 : i32
    return %arg0, %c0_i32, %c0_i32_0 : i32, i32, i32
  }
}

</mosaic_0001>

<bundles_post_ra>
// kernel: res_block_forward.1
= control target key start
LH: loop header
LB: loop body
LE: loop exit
PB: predicated region body
PF: predicated region fallthrough
CT: control target
= control target key end

     0   :  { %s10310_s15 = smov 0   ;;  %s10912_s0 = inlined_call_operand.vmem [shape: f32[2,4,256], index: 0, kind: input, shape index: {}]   ;;  %s10913_s1 = inlined_call_operand.vmem [shape: f32[10,4,4], index: 1, kind: input, shape index: {}]   ;;  %s10914_s2 = inlined_call_operand.vmem [shape: f32[10,4,4], index: 2, kind: input, shape index: {}]   ;;  %s10915_s3 = inlined_call_operand.vmem [shape: f32[9,4,256], index: 3, kind: input, shape index: {}]   ;;  %s10916_s4 = inlined_call_operand.vmem [shape: f32[2,4,256], index: 4, kind: output, shape index: {}]  }
   0x1 LB: > { %s9966_s16 = sadd.s32 4294967295, %s10272_s15   ;;  %p9970_p0 = scmp.ge.s32.totalorder %s10272_s15, 1  ;;  %s10272_s15 = sphi %s10310_s15, %s14_s15  }
   0x2   : > { %p162_p1 = scmp.lt.s32.totalorder %s10272_s15, 3 }
   0x4   : > { %p163_p2 = pnand %p9970_p0, %p162_p1 }
   0x5   : > { %p188_p3 = scmp.lt.s32.totalorder (!%p163_p2), %s9966_s16, 1  ;;  %v10274_v2 = vmov (!%p163_p2), 0.0   ;;  %s10275_s21 = smov (!%p163_p2), 17   ;;  %v199_v4 = vld [vmem:[%s10913_s1] sm:$0xf] (!%p163_p2)  ;;  %vm252_vm0 = vcmask (!%p163_p2), 31744   ;;  %v242_v7 = vlaneseq (!%p163_p2) }
   0x6   : > { %166 = sbr.rel (%p163_p2) target bundleno = 1646 (0x66e), region = 36  ;;  %329 = vmatprep.mubr.f32.mxu0 (!%p163_p2), %v10274_v2  ;;  %5174 = vmatprep.mubr.f32.mxu1 (!%p163_p2), %v10274_v2  ;;  %s10276_s22 = smov (!%p163_p2), 16   ;;  %v254_v5 = vsel (!%p163_p2), %vm252_vm0, %v199_v4, 0  ;;  %v219_v10 = vld [vmem:[%s10915_s3] sm:$0xff] (!%p163_p2)  ;;  %vm256_vm2 = vcmask (!%p163_p2), 1043456   ;;  %v10279_v34 = vmov (!%p163_p2), 0  }
   0x7   : > { %s10277_s23 = smov (!%p163_p2), 15   ;;  %s10278_s24 = smov (!%p163_p2), 1   ;;  %v10357_v6 = vand.u32 (!%p163_p2), 4294901760, %v254_v5  ;;  %v10360_v9 = vand.u32 (!%p163_p2), 127, %v242_v7  ;;  %v10366_v13 = vcombine.high (!%p163_p2), %v219_v10, %v219_v10  ;;  %v208_v33 = vld [vmem:[%s10913_s1 + $0x24] sm:$0xf] (!%p163_p2) }
   0x8   : > { %v732_v35 = vsel (!%p163_p2), %vm256_vm2, 1.0, %v10279_v34  ;;  %v729_v36 = vsel (!%p163_p2), %vm252_vm0, %v208_v33, 0  ;;  %s10280_s5 = smov (!%p163_p2), 127   ;;  %v10281_v41 = vmov (!%p163_p2), 1.0   ;;  %v9975_v48 = vld [vmem:[%s10915_s3 + $0x8] sm:$0xff] (!%p163_p2)  ;;  %s10282_s10 = smov (!%p163_p2), 113  }
   0x9   : > { %v331_v8 = vsub.f32 (!%p163_p2), %v254_v5, %v10357_v6  ;;  %vm244_vm1 = vcmp.lt.s32.totalorder (!%p163_p2), %v10360_v9, 17  ;;  %v10385_v37 = vsub.f32 (!%p163_p2), %v732_v35, %v732_v35  ;;  %v10391_v38 = vand.u32 (!%p163_p2), 4294901760, %v729_v36  ;;  %v200_v56 = vld [vmem:[%s10913_s1 + $0x4] sm:$0xf] (!%p163_p2)  ;;  %s10283_s18 = smov (!%p163_p2), 112   ;;  %s10284_s28 = smov (!%p163_p2), 111  }
   0xa   : > { %vm1203_vm3 = vcmp.lt.s32.totalorder (!%p163_p2), %v10360_v9, 16  ;;  %v10422_v50 = vcombine.high (!%p163_p2), %v9975_v48, %v9975_v48  ;;  %v1212_v58 = vsel (!%p163_p2), %vm252_vm0, %v200_v56, 0  ;;  %vm1691_vm4 = vcmp.lt.s32.totalorder (!%p163_p2), %v10360_v9, 15 }
   0xb   : > { %v332_v12 = vand.u32 (!%p163_p2), 4294901760, %v331_v8  ;;  %v10394_v39 = vand.u32 (!%p163_p2), 4294901760, %v10385_v37  ;;  %v802_v40 = vsub.f32 (!%p163_p2), %v729_v36, %v10391_v38  ;;  %v10447_v61 = vand.u32 (!%p163_p2), 4294901760, %v1212_v58 }
   0xc   : > { %vm2179_vm5 = vcmp.lt.s32.totalorder (!%p163_p2), %v10360_v9, 1  ;;  %vm3141_vm6 = vcmp.lt.s32.totalorder (!%p163_p2), %v10360_v9, 127  ;;  %vm3629_vm7 = vcmp.lt.s32.totalorder (!%p163_p2), %v10360_v9, 113  ;;  %vm4117_vm8 = vcmp.lt.s32.totalorder (!%p163_p2), %v10360_v9, 112 }
   0xd   : > { %s10918_s16 = smov (!%p188_p3, %s9966_s16), 1  ;;  %v333_v17 = vsub.f32 %v331_v8, %v332_v12  ;;  %v815_v42 = vsub.f32 %v10385_v37, %v10394_v39  ;;  %v803_v43 = vand.u32 4294901760, %v802_v40  ;;  %vm4605_vm9 = vcmp.lt.s32.totalorder %v10360_v9, 111 }
   0xe   : > { %s9996_s17 = sshll.u32 %s10918_s16, 3 }
   0xf   : > { %s10326_s20 = scalar_lea.vmem %s10912_s0, %s9996_s17  ;;  %v334_v24 = vand.u32 4294901760, %v333_v17  ;;  %v10403_v44 = vand.u32 4294901760, %v815_v42  ;;  %v804_v45 = vsub.f32 %v802_v40, %v803_v43  ;;  %s197_s8 = scalar_lea.vmem %s10916_s4, %s9996_s17 }
  0x10   : > { %v198_v0 = vld [vmem:[%s10326_s20] sm:$0xff] }
  0x11   : > { %v10329_v1 = vmax.f32 %v198_v0, 0.0  ;;  %v805_v46 = vand.u32 4294901760, %v804_v45  ;;  %v1288_v0 = vsub.f32 %v1212_v58, %v10447_v61 }
  0x13   : > { %238 = vrot.lane.b32.xlu0 %v10329_v1, %s10275_s21  ;;  %v10337_v3 = vcombine.high %v10329_v1, %v10329_v1  ;;  %1199 = vrot.lane.b32.xlu1 %v10329_v1, %s10276_s22 }
  0x17   : > { %240 = vrot.lane.b32.xlu0 %v10337_v3, %s10275_s21  ;;  %1201 = vrot.lane.b32.xlu1 %v10337_v3, %s10276_s22 }
  0x1b   : > { %1689 = vrot.lane.b32.xlu1 %v10337_v3, %s10277_s23  ;;  %1687 = vrot.lane.b32.xlu0 %v10329_v1, %s10277_s23 }
  0x1f   : > { %2177 = vrot.lane.b32.xlu1 %v10337_v3, %s10278_s24  ;;  %2175 = vrot.lane.b32.xlu0 %v10329_v1, %s10278_s24 }
  0x23   : > { %3139 = vrot.lane.b32.xlu1 %v10337_v3, %s10280_s5  ;;  %3137 = vrot.lane.b32.xlu0 %v10329_v1, %s10280_s5 }
  0x27   : > { %3627 = vrot.lane.b32.xlu1 %v10337_v3, %s10282_s10  ;;  %3625 = vrot.lane.b32.xlu0 %v10329_v1, %s10282_s10 }
  0x2b   : > { %4115 = vrot.lane.b32.xlu1 %v10337_v3, %s10283_s18  ;;  %4113 = vrot.lane.b32.xlu0 %v10329_v1, %s10283_s18 }
  0x2f   : > { %4603 = vrot.lane.b32.xlu1 %v10337_v3, %s10284_s28  ;;  %4601 = vrot.lane.b32.xlu0 %v10329_v1, %s10284_s28 }
  0x85   : > { %v239_v11 = vpop.permute.xlu0 %238  ;;  %v1200_v47 = vpop.permute.xlu1 %1199 }
  0x89   : > { %v241_v14 = vpop.permute.xlu0 %240  ;;  %v1202_v49 = vpop.permute.xlu1 %1201 }
  0x8a   : > { %v245_v15 = vsel %vm244_vm1, %v239_v11, %v241_v14  ;;  %v246_v16 = vsel %vm244_vm1, %v241_v14, %v239_v11  ;;  %v1204_v51 = vsel %vm1203_vm3, %v1200_v47, %v1202_v49  ;;  %v1205_v54 = vsel %vm1203_vm3, %v1202_v49, %v1200_v47 }
  0x8b   : > { %v250_v18 = vmul.f32 %v246_v16, %v219_v10  ;;  %v251_v19 = vmul.f32 %v10366_v13, %v245_v15  ;;  %v1210_v52 = vmul.f32 %v10422_v50, %v1204_v51  ;;  %v1209_v57 = vmul.f32 %v9975_v48, %v1205_v54  ;;  %v9976_v15 = vld [vmem:[%s10915_s3 + $0x10] sm:$0xff] }
  0x8d   : > { %v258_v20 = vsel %vm256_vm2, %v250_v18, 0  ;;  %v261_v21 = vsel %vm256_vm2, %v251_v19, 0  ;;  %v1218_v53 = vsel %vm256_vm2, %v1210_v52, 0  ;;  %v1215_v60 = vsel %vm256_vm2, %v1209_v57, 0  ;;  %v1690_v16 = vpop.permute.xlu1 %1689  ;;  %v1688_v17 = vpop.permute.xlu0 %1687  ;;  %v202_v57 = vld [vmem:[%s10913_s1 + $0xc] sm:$0xf] }
  0x8e   : > { %v263_v22 = vand.u32 4294901760, %v261_v21  ;;  %v265_v23 = vand.u32 4294901760, %v258_v20  ;;  %v1220_v55 = vand.u32 4294901760, %v1218_v53  ;;  %v1222_v63 = vand.u32 4294901760, %v1215_v60 }
  0x8f   : > { %v10463_v18 = vcombine.high %v9976_v15, %v9976_v15  ;;  %v1692_v19 = vsel %vm1691_vm4, %v1688_v17, %v1690_v16  ;;  %v2188_v58 = vsel %vm252_vm0, %v202_v57, 0 }
  0x90   : > { %v342_v25 = vsub.f32 %v261_v21, %v263_v22  ;;  %v348_v26 = vsub.f32 %v258_v20, %v265_v23  ;;  %264 = vmatprep.subr.mxu0 %v263_v22  ;;  %v1299_v59 = vsub.f32 %v1218_v53, %v1220_v55  ;;  %v1305_v5 = vsub.f32 %v1215_v60, %v1222_v63 }
  0x91   : > { %266 = vmatpush1.msra.mxu0 %v265_v23  ;;  %v1698_v20 = vmul.f32 %v10463_v18, %v1692_v19  ;;  %v1693_v21 = vsel %vm1691_vm4, %v1690_v16, %v1688_v17  ;;  %v2178_v47 = vpop.permute.xlu1 %2177  ;;  %v2176_v48 = vpop.permute.xlu0 %2175  ;;  %v203_v17 = vld [vmem:[%s10913_s1 + $0x10] sm:$0xf] }
  0x92   : > { %335 = vmatmul.mubr.f32.vlgmr.msra.gmra.mrb[0].mxu0 %v334_v24  ;;  %v343_v27 = vand.u32 4294901760, %v342_v25  ;;  %v349_v28 = vand.u32 4294901760, %v348_v26  ;;  %v1300_v62 = vand.u32 4294901760, %v1299_v59  ;;  %v2180_v51 = vsel %vm2179_vm5, %v2176_v48, %v2178_v47 }
  0x93   : > { %415 = vmatprep.mubr.f32.mxu0 %v10274_v2  ;;  %v2181_v53 = vsel %vm2179_vm5, %v2178_v47, %v2176_v48  ;;  %v2664_v19 = vsel %vm252_vm0, %v203_v17, 0  ;;  %v204_v47 = vld [vmem:[%s10913_s1 + $0x14] sm:$0xf]  ;;  %v205_v17 = vld [vmem:[%s10913_s1 + $0x18] sm:$0xf] }
  0x94   : > { %v344_v29 = vsub.f32 %v342_v25, %v343_v27  ;;  %v350_v30 = vsub.f32 %v348_v26, %v349_v28  ;;  %v1301_v4 = vsub.f32 %v1299_v59, %v1300_v62  ;;  %v3150_v48 = vsel %vm252_vm0, %v204_v47, 0 }
  0x96   : > { %v345_v31 = vand.u32 4294901760, %v344_v29  ;;  %v351_v32 = vand.u32 4294901760, %v350_v30  ;;  %v1302_v7 = vand.u32 4294901760, %v1301_v4 }
  0x98   : > { %346 = vmatprep.subr.mxu0 %v345_v31 }
  0x99   : > { %352 = vmatpush1.msra.mxu0 %v351_v32 }
  0x9a   : > { %417 = vmatmul.mubr.f32.vlgmr.msra.gmra.mrb[0].mxu0 %v10357_v6  ;;  %425 = vmatprep.subr.mxu0 %v342_v25  ;;  %v201_v25 = vld [vmem:[%s10913_s1 + $0x8] sm:$0xf] }
  0x9b   : > { %428 = vmatpush1.msra.mxu0 %v348_v26  ;;  %491 = vmatprep.mubr.f32.mxu0 %v10274_v2  ;;  %v1700_v26 = vsel %vm252_vm0, %v201_v25, 0 }
  0x9c   : > { %501 = vmatprep.subr.mxu0 %v263_v22  ;;  %v10482_v29 = vand.u32 4294901760, %v1700_v26 }
  0x9e   : > { %v1776_v32 = vsub.f32 %v1700_v26, %v10482_v29 }
  0xa0   : > { %v1777_v35 = vand.u32 4294901760, %v1776_v32 }
  0xa2   : > { %494 = vmatmul.mubr.f32.vlgmr.msra.gmra.mrb[0].mxu0 %v331_v8  ;;  %v1306_v8 = vand.u32 4294901760, %v1305_v5 }
  0xa3   : > { %503 = vmatpush1.msra.mxu0 %v265_v23  ;;  %566 = vmatprep.mubr.f32.mxu0 %v10274_v2 }
  0xa4   : > { %579 = vmatprep.subr.mxu0 %v343_v27  ;;  %v1307_v11 = vsub.f32 %v1305_v5, %v1306_v8 }
  0xa6   : > { %v1308_v14 = vand.u32 4294901760, %v1307_v11 }
  0xaa   : > { %570 = vmatmul.mubr.f32.vlgmr.msra.gmra.mrb[0].mxu0 %v332_v12 }
  0xab   : > { %583 = vmatpush1.msra.mxu0 %v349_v28  ;;  %646 = vmatprep.mubr.f32.mxu0 %v10274_v2 }
  0xac   : > { %655 = vmatprep.subr.mxu0 %v263_v22  ;;  %v1706_v22 = vsel %vm256_vm2, %v1698_v20, 0  ;;  %v2666_v20 = vsel %vm256_vm2, %v10329_v1, 0 }
  0xad   : > { %v1708_v24 = vand.u32 4294901760, %v1706_v22 }
  0xaf   : > { %v1787_v28 = vsub.f32 %v1706_v22, %v1708_v24  ;;  %v10531_v22 = vand.u32 4294901760, %v2664_v19 }
  0xb1   : > { %v1788_v31 = vand.u32 4294901760, %v1787_v28 }
  0xb2   : > { %648 = vmatmul.mubr.f32.vlgmr.msra.gmra.mrb[0].mxu0 %v10357_v6 }
  0xb3   : > { %657 = vmatpush1.msra.mxu0 %v265_v23  ;;  %720 = vmatprep.mubr.f32.mxu0 %v10274_v2  ;;  %v1697_v23 = vmul.f32 %v9976_v15, %v1693_v21  ;;  %v1789_v34 = vsub.f32 %v1787_v28, %v1788_v31  ;;  %v2668_v15 = vsel %vm256_vm2, %v10337_v3, 0 }
  0xb4   : > { %9982 = vmatprep.subr.msk.mxu0 %vm256_vm2, %v10281_v41  ;;  %v2670_v16 = vand.u32 4294901760, %v2668_v15 }
  0xb5   : > { %v1703_v27 = vsel %vm256_vm2, %v1697_v23, 0  ;;  %v2672_v23 = vand.u32 4294901760, %v2666_v20 }
  0xb6   : > { %v1710_v30 = vand.u32 4294901760, %v1703_v27  ;;  %v2749_v21 = vsub.f32 %v2668_v15, %v2670_v16 }
  0xb7   : > { %v2755_v25 = vsub.f32 %v2666_v20, %v2672_v23 }
  0xb8   : > { %v1793_v33 = vsub.f32 %v1703_v27, %v1710_v30  ;;  %v2750_v3 = vand.u32 4294901760, %v2749_v21 }
  0xba   : > { %722 = vmatmul.mubr.f32.vlgmr.msra.gmra.mrb[0].mxu0 %v10357_v6  ;;  %v1289_v6 = vand.u32 4294901760, %v1288_v0  ;;  %v1794_v36 = vand.u32 4294901760, %v1793_v33  ;;  %v2751_v26 = vsub.f32 %v2749_v21, %v2750_v3 }
  0xbb   : > { %9983 = vmatpush1.msk.msra.mxu0 %vm256_vm2, %v10281_v41  ;;  %800 = vmatprep.mubr.f32.mxu0 %v10274_v2 }
  0xbc   : > { %817 = vmatprep.subr.mxu0 %v10403_v44  ;;  %v1290_v10 = vsub.f32 %v1288_v0, %v1289_v6  ;;  %v1795_v42 = vsub.f32 %v1793_v33, %v1794_v36 }
  0xbe   : > { %v1291_v12 = vand.u32 4294901760, %v1290_v10  ;;  %v1796_v45 = vand.u32 4294901760, %v1795_v42 }
  0xc2   : > { %806 = vmatmul.mubr.f32.vlgmr.msra.gmra.mrb[0].mxu0 %v805_v46  ;;  %v9977_v46 = vld [vmem:[%s10915_s3 + $0x18] sm:$0xff] }
  0xc3   : > { %823 = vmatpush1.msra.mxu0 %v10403_v44  ;;  %886 = vmatprep.mubr.f32.mxu0 %v10274_v2  ;;  %v10496_v49 = vcombine.high %v9977_v46, %v9977_v46 }
  0xc4   : > { %896 = vmatprep.subr.mxu0 %v10385_v37 }
  0xc5   : > { %v2186_v52 = vmul.f32 %v10496_v49, %v2180_v51 }
  0xc7   : > { %v2194_v54 = vsel %vm256_vm2, %v2186_v52, 0 }
  0xc8   : > { %v2196_v56 = vand.u32 4294901760, %v2194_v54 }
  0xca   : > { %888 = vmatmul.mubr.f32.vlgmr.msra.gmra.mrb[0].mxu0 %v10391_v38  ;;  %v2275_v60 = vsub.f32 %v2194_v54, %v2196_v56 }
  0xcb   : > { %899 = vmatpush1.msra.mxu0 %v10385_v37  ;;  %962 = vmatprep.mubr.f32.mxu0 %v10274_v2 }
  0xcc   : > { %9984 = vmatprep.subr.msk.mxu0 %vm256_vm2, %v10281_v41 }
  0xd2   : > { %965 = vmatmul.mubr.f32.vlgmr.msra.gmra.mrb[0].mxu0 %v802_v40  ;;  %v1778_v40 = vsub.f32 %v1776_v32, %v1777_v35 }
  0xd3   : > { %9985 = vmatpush1.msk.msra.mxu0 %vm256_vm2, %v10281_v41  ;;  %1037 = vmatprep.mubr.f32.mxu0 %v10274_v2 }
  0xd4   : > { %1050 = vmatprep.subr.mxu0 %v10394_v39 }
  0xda   : > { %1041 = vmatmul.mubr.f32.vlgmr.msra.gmra.mrb[0].mxu0 %v803_v43  ;;  %v1779_v43 = vand.u32 4294901760, %v1778_v40 }
  0xdb   : > { %1054 = vmatpush1.msra.mxu0 %v10394_v39  ;;  %1117 = vmatprep.mubr.f32.mxu0 %v10274_v2 }
  0xdc   : > { %9986 = vmatprep.subr.msk.mxu0 %vm256_vm2, %v10281_v41 }
  0xe2   : > { %1119 = vmatmul.mubr.f32.vlgmr.msra.gmra.mrb[0].mxu0 %v10391_v38 }
  0xe3   : > { %9987 = vmatpush1.msk.msra.mxu0 %vm256_vm2, %v10281_v41  ;;  %1191 = vmatprep.mubr.f32.mxu0 %v10274_v2 }
  0xe4   : > { %1221 = vmatprep.subr.mxu0 %v1220_v55 }
  0xea   : > { %1193 = vmatmul.mubr.f32.vlgmr.msra.gmra.mrb[0].mxu0 %v10391_v38  ;;  %v1790_v38 = vand.u32 4294901760, %v1789_v34  ;;  %v3140_v34 = vpop.permute.xlu1 %3139 }
  0xeb   : > { %1223 = vmatpush1.msra.mxu0 %v1222_v63  ;;  %1286 = vmatprep.mubr.f32.mxu0 %v10274_v2 }
  0xec   : > { %1303 = vmatprep.subr.mxu0 %v1302_v7 }
  0xf2   : > { %1292 = vmatmul.mubr.f32.vlgmr.msra.gmra.mrb[0].mxu0 %v1291_v12 }
  0xf3   : > { %1309 = vmatpush1.msra.mxu0 %v1308_v14  ;;  %1372 = vmatprep.mubr.f32.mxu0 %v10274_v2 }
  0xf4   : > { %1382 = vmatprep.subr.mxu0 %v1299_v59 }
  0xfa   : > { %1374 = vmatmul.mubr.f32.vlgmr.msra.gmra.mrb[0].mxu0 %v10447_v61 }
  0xfb   : > { %1385 = vmatpush1.msra.mxu0 %v1305_v5  ;;  %1448 = vmatprep.mubr.f32.mxu0 %v10274_v2 }
  0xfc   : > { %1458 = vmatprep.subr.mxu0 %v1220_v55 }
 0x102   : > { %1451 = vmatmul.mubr.f32.vlgmr.msra.gmra.mrb[0].mxu0 %v1288_v0 }
 0x103   : > { %1460 = vmatpush1.msra.mxu0 %v1222_v63  ;;  %1523 = vmatprep.mubr.f32.mxu0 %v10274_v2 }
 0x104   : > { %1536 = vmatprep.subr.mxu0 %v1300_v62 }
 0x10a   : > { %1527 = vmatmul.mubr.f32.vlgmr.msra.gmra.mrb[0].mxu0 %v1289_v6 }
 0x10b   : > { %1540 = vmatpush1.msra.mxu0 %v1306_v8  ;;  %1603 = vmatprep.mubr.f32.mxu0 %v10274_v2 }
 0x10c   : > { %1612 = vmatprep.subr.mxu0 %v1220_v55  ;;  %v2185_v55 = vmul.f32 %v9977_v46, %v2181_v53  ;;  %v10563_v53 = vand.u32 4294901760, %v3150_v48 }
 0x10e   : > { %v2191_v59 = vsel %vm256_vm2, %v2185_v55, 0 }
 0x10f   : > { %v2198_v62 = vand.u32 4294901760, %v2191_v59 }
 0x111   : > { %v2281_v4 = vsub.f32 %v2191_v59, %v2198_v62 }
 0x112   : > { %1605 = vmatmul.mubr.f32.vlgmr.msra.gmra.mrb[0].mxu0 %v10447_v61 }
 0x113   : > { %1614 = vmatpush1.msra.mxu0 %v1222_v63  ;;  %1677 = vmatprep.mubr.f32.mxu0 %v10274_v2  ;;  %v2276_v63 = vand.u32 4294901760, %v2275_v60  ;;  %v2282_v7 = vand.u32 4294901760, %v2281_v4 }
 0x114   : > { %1709 = vmatprep.subr.mxu0 %v1708_v24 }
 0x115   : > { %v2277_v5 = vsub.f32 %v2275_v60, %v2276_v63  ;;  %v2283_v11 = vsub.f32 %v2281_v4, %v2282_v7 }
 0x117   : > { %v2278_v8 = vand.u32 4294901760, %v2277_v5  ;;  %v2284_v14 = vand.u32 4294901760, %v2283_v11  ;;  %v10575_v5 = vld [vmem:[%s10915_s3 + $0x30] sm:$0xff] }
 0x11a   : > { %1679 = vmatmul.mubr.f32.vlgmr.msra.gmra.mrb[0].mxu0 %v10447_v61  ;;  %v2263_v61 = vand.u32 4294901760, %v2188_v58 }
 0x11b   : > { %1711 = vmatpush1.msra.mxu0 %v1710_v30  ;;  %1774 = vmatprep.mubr.f32.mxu0 %v10274_v2 }
 0x11c   : > { %1791 = vmatprep.subr.mxu0 %v1790_v38  ;;  %v2264_v0 = vsub.f32 %v2188_v58, %v2263_v61 }
 0x11e   : > { %v2265_v6 = vand.u32 4294901760, %v2264_v0 }
 0x120   : > { %v2266_v10 = vsub.f32 %v2264_v0, %v2265_v6 }
 0x122   : > { %1780 = vmatmul.mubr.f32.vlgmr.msra.gmra.mrb[0].mxu0 %v1779_v43  ;;  %v2267_v12 = vand.u32 4294901760, %v2266_v10 }
 0x123   : > { %1797 = vmatpush1.msra.mxu0 %v1796_v45  ;;  %1860 = vmatprep.mubr.f32.mxu0 %v10274_v2 }
 0x124   : > { %1870 = vmatprep.subr.mxu0 %v1787_v28  ;;  %v2756_v28 = vand.u32 4294901760, %v2755_v25 }
 0x126   : > { %v2757_v1 = vsub.f32 %v2755_v25, %v2756_v28 }
 0x12a   : > { %1862 = vmatmul.mubr.f32.vlgmr.msra.gmra.mrb[0].mxu0 %v10482_v29 }
 0x12b   : > { %1873 = vmatpush1.msra.mxu0 %v1793_v33  ;;  %1936 = vmatprep.mubr.f32.mxu0 %v10274_v2  ;;  %v10541_v33 = vld [vmem:[%s10915_s3 + $0x28] sm:$0xff] }
 0x12c   : > { %1946 = vmatprep.subr.mxu0 %v1708_v24 }
 0x132   : > { %1939 = vmatmul.mubr.f32.vlgmr.msra.gmra.mrb[0].mxu0 %v1776_v32  ;;  %v2758_v32 = vand.u32 4294901760, %v2757_v1 }
 0x133   : > { %1948 = vmatpush1.msra.mxu0 %v1710_v30  ;;  %2011 = vmatprep.mubr.f32.mxu0 %v10274_v2 }
 0x134   : > { %2024 = vmatprep.subr.mxu0 %v1788_v31 }
 0x13a   : > { %2015 = vmatmul.mubr.f32.vlgmr.msra.gmra.mrb[0].mxu0 %v1777_v35  ;;  %v3138_v35 = vpop.permute.xlu0 %3137 }
 0x13b   : > { %2028 = vmatpush1.msra.mxu0 %v1794_v36  ;;  %2091 = vmatprep.mubr.f32.mxu0 %v10274_v2  ;;  %v10547_v36 = vcombine.high %v10541_v33, %v10541_v33  ;;  %v3143_v38 = vsel %vm3141_vm6, %v3140_v34, %v3138_v35  ;;  %v3142_v42 = vsel %vm3141_vm6, %v3138_v35, %v3140_v34  ;;  %v10609_v34 = vld [vmem:[%s10915_s3 + $0x38] sm:$0xff] }
 0x13c   : > { %2100 = vmatprep.subr.mxu0 %v1708_v24  ;;  %v2738_v24 = vsub.f32 %v2664_v19, %v10531_v22  ;;  %v3147_v45 = vmul.f32 %v10541_v33, %v3142_v42  ;;  %v3638_v19 = vsel %vm252_vm0, %v205_v17, 0 }
 0x13d   : > { %v3148_v40 = vmul.f32 %v10547_v36, %v3143_v38 }
 0x13e   : > { %v2739_v27 = vand.u32 4294901760, %v2738_v24  ;;  %v3153_v51 = vsel %vm256_vm2, %v3147_v45, 0 }
 0x13f   : > { %v3156_v43 = vsel %vm256_vm2, %v3148_v40, 0  ;;  %v3160_v54 = vand.u32 4294901760, %v3153_v51  ;;  %v10615_v40 = vcombine.high %v10609_v34, %v10609_v34 }
 0x140   : > { %v3158_v46 = vand.u32 4294901760, %v3156_v43 }
 0x141   : > { %v3243_v57 = vsub.f32 %v3153_v51, %v3160_v54  ;;  %v206_v51 = vld [vmem:[%s10913_s1 + $0x1c] sm:$0xf] }
 0x142   : > { %2093 = vmatmul.mubr.f32.vlgmr.msra.gmra.mrb[0].mxu0 %v10482_v29  ;;  %v3237_v52 = vsub.f32 %v3156_v43, %v3158_v46 }
 0x143   : > { %2102 = vmatpush1.msra.mxu0 %v1710_v30  ;;  %2165 = vmatprep.mubr.f32.mxu0 %v10274_v2  ;;  %v2740_v30 = vsub.f32 %v2738_v24, %v2739_v27 }
 0x144   : > { %2197 = vmatprep.subr.mxu0 %v2196_v56  ;;  %v3238_v55 = vand.u32 4294901760, %v3237_v52 }
 0x145   : > { %v2741_v31 = vand.u32 4294901760, %v2740_v30 }
 0x146   : > { %v3239_v58 = vsub.f32 %v3237_v52, %v3238_v55 }
 0x14a   : > { %2167 = vmatmul.mubr.f32.vlgmr.msra.gmra.mrb[0].mxu0 %v10482_v29  ;;  %v2752_v29 = vand.u32 4294901760, %v2751_v26 }
 0x14b   : > { %2199 = vmatpush1.msra.mxu0 %v2198_v62  ;;  %2262 = vmatprep.mubr.f32.mxu0 %v10274_v2 }
 0x14c   : > { %2279 = vmatprep.subr.mxu0 %v2278_v8  ;;  %v10581_v8 = vcombine.high %v10575_v5, %v10575_v5 }
 0x152   : > { %2268 = vmatmul.mubr.f32.vlgmr.msra.gmra.mrb[0].mxu0 %v2267_v12 }
 0x153   : > { %2285 = vmatpush1.msra.mxu0 %v2284_v14  ;;  %2348 = vmatprep.mubr.f32.mxu0 %v10274_v2 }
 0x154   : > { %2358 = vmatprep.subr.mxu0 %v2275_v60  ;;  %v3244_v60 = vand.u32 4294901760, %v3243_v57 }
 0x15a   : > { %2350 = vmatmul.mubr.f32.vlgmr.msra.gmra.mrb[0].mxu0 %v2263_v61 }
 0x15b   : > { %2361 = vmatpush1.msra.mxu0 %v2281_v4  ;;  %2424 = vmatprep.mubr.f32.mxu0 %v10274_v2 }
 0x15c   : > { %2434 = vmatprep.subr.mxu0 %v2196_v56 }
 0x162   : > { %2427 = vmatmul.mubr.f32.vlgmr.msra.gmra.mrb[0].mxu0 %v2264_v0 }
 0x163   : > { %2436 = vmatpush1.msra.mxu0 %v2198_v62  ;;  %2499 = vmatprep.mubr.f32.mxu0 %v10274_v2 }
 0x164   : > { %2512 = vmatprep.subr.mxu0 %v2276_v63  ;;  %v3245_v63 = vsub.f32 %v3243_v57, %v3244_v60 }
 0x166   : > { %v3246_v4 = vand.u32 4294901760, %v3245_v63 }
 0x16a   : > { %2503 = vmatmul.mubr.f32.vlgmr.msra.gmra.mrb[0].mxu0 %v2265_v6  ;;  %v3628_v6 = vpop.permute.xlu1 %3627 }
 0x16b   : > { %2516 = vmatpush1.msra.mxu0 %v2282_v7  ;;  %2579 = vmatprep.mubr.f32.mxu0 %v10274_v2  ;;  %v3626_v7 = vpop.permute.xlu0 %3625 }
 0x16c   : > { %2588 = vmatprep.subr.mxu0 %v2196_v56  ;;  %v3226_v56 = vsub.f32 %v3150_v48, %v10563_v53  ;;  %v3631_v10 = vsel %vm3629_vm7, %v3628_v6, %v3626_v7  ;;  %v3630_v12 = vsel %vm3629_vm7, %v3626_v7, %v3628_v6 }
 0x16d   : > { %v3636_v11 = vmul.f32 %v10581_v8, %v3631_v10  ;;  %v3635_v15 = vmul.f32 %v10575_v5, %v3630_v12  ;;  %v10643_v10 = vld [vmem:[%s10915_s3 + $0x40] sm:$0xff] }
 0x16e   : > { %v3227_v59 = vand.u32 4294901760, %v3226_v56  ;;  %v4116_v35 = vpop.permute.xlu1 %4115 }
 0x16f   : > { %v3644_v14 = vsel %vm256_vm2, %v3636_v11, 0  ;;  %v3641_v20 = vsel %vm256_vm2, %v3635_v15, 0  ;;  %v4114_v38 = vpop.permute.xlu0 %4113 }
 0x170   : > { %v4119_v42 = vsel %vm4117_vm8, %v4116_v35, %v4114_v38  ;;  %v4118_v45 = vsel %vm4117_vm8, %v4114_v38, %v4116_v35 }
 0x171   : > { %v4124_v43 = vmul.f32 %v10615_v40, %v4119_v42  ;;  %v4123_v47 = vmul.f32 %v10609_v34, %v4118_v45 }
 0x172   : > { %2581 = vmatmul.mubr.f32.vlgmr.msra.gmra.mrb[0].mxu0 %v2263_v61  ;;  %v4604_v11 = vpop.permute.xlu1 %4603 }
 0x173   : > { %2590 = vmatpush1.msra.mxu0 %v2198_v62  ;;  %2653 = vmatprep.mubr.f32.mxu0 %v10274_v2  ;;  %v3228_v62 = vsub.f32 %v3226_v56, %v3227_v59  ;;  %v4602_v12 = vpop.permute.xlu0 %4601 }
 0x174   : > { %2671 = vmatprep.subr.mxu0 %v2670_v16  ;;  %v4607_v15 = vsel %vm4605_vm9, %v4604_v11, %v4602_v12  ;;  %v4606_v17 = vsel %vm4605_vm9, %v4602_v12, %v4604_v11 }
 0x175   : > { %v3229_v0 = vand.u32 4294901760, %v3228_v62 }
 0x17a   : > { %2655 = vmatmul.mubr.f32.vlgmr.msra.gmra.mrb[0].mxu0 %v2263_v61  ;;  %v3240_v61 = vand.u32 4294901760, %v3239_v58 }
 0x17b   : > { %2673 = vmatpush1.msra.mxu0 %v2672_v23  ;;  %2736 = vmatprep.mubr.f32.mxu0 %v10274_v2 }
 0x17c   : > { %2753 = vmatprep.subr.mxu0 %v2752_v29 }
 0x182   : > { %2742 = vmatmul.mubr.f32.vlgmr.msra.gmra.mrb[0].mxu0 %v2741_v31 }
 0x183   : > { %2759 = vmatpush1.msra.mxu0 %v2758_v32  ;;  %2822 = vmatprep.mubr.f32.mxu0 %v10274_v2 }
 0x184   : > { %2832 = vmatprep.subr.mxu0 %v2749_v21 }
 0x18a   : > { %2824 = vmatmul.mubr.f32.vlgmr.msra.gmra.mrb[0].mxu0 %v10531_v22 }
 0x18b   : > { %2835 = vmatpush1.msra.mxu0 %v2755_v25  ;;  %2898 = vmatprep.mubr.f32.mxu0 %v10274_v2 }
 0x18c   : > { %2908 = vmatprep.subr.mxu0 %v2670_v16 }
 0x192   : > { %2901 = vmatmul.mubr.f32.vlgmr.msra.gmra.mrb[0].mxu0 %v2738_v24 }
 0x193   : > { %2910 = vmatpush1.msra.mxu0 %v2672_v23  ;;  %2973 = vmatprep.mubr.f32.mxu0 %v10274_v2 }
 0x194   : > { %2986 = vmatprep.subr.mxu0 %v2750_v3 }
 0x19a   : > { %2977 = vmatmul.mubr.f32.vlgmr.msra.gmra.mrb[0].mxu0 %v2739_v27 }
 0x19b   : > { %2990 = vmatpush1.msra.mxu0 %v2756_v28  ;;  %3053 = vmatprep.mubr.f32.mxu0 %v10274_v2 }
 0x19c   : > { %3062 = vmatprep.subr.mxu0 %v2670_v16  ;;  %v3646_v16 = vand.u32 4294901760, %v3644_v14 }
 0x19e   : > { %v3725_v21 = vsub.f32 %v3644_v14, %v3646_v16  ;;  %v10649_v14 = vcombine.high %v10643_v10, %v10643_v10 }
 0x1a0   : > { %v3726_v3 = vand.u32 4294901760, %v3725_v21 }
 0x1a2   : > { %3055 = vmatmul.mubr.f32.vlgmr.msra.gmra.mrb[0].mxu0 %v10531_v22  ;;  %v3727_v26 = vsub.f32 %v3725_v21, %v3726_v3 }
 0x1a3   : > { %3064 = vmatpush1.msra.mxu0 %v2672_v23  ;;  %3127 = vmatprep.mubr.f32.mxu0 %v10274_v2  ;;  %v3648_v23 = vand.u32 4294901760, %v3641_v20 }
 0x1a4   : > { %3159 = vmatprep.subr.mxu0 %v3158_v46  ;;  %v3728_v29 = vand.u32 4294901760, %v3727_v26 }
 0x1a5   : > { %v3731_v25 = vsub.f32 %v3641_v20, %v3648_v23  ;;  %v4611_v20 = vmul.f32 %v10643_v10, %v4606_v17 }
 0x1a7   : > { %v3732_v28 = vand.u32 4294901760, %v3731_v25 }
 0x1a9   : > { %v3733_v1 = vsub.f32 %v3731_v25, %v3732_v28 }
 0x1aa   : > { %3129 = vmatmul.mubr.f32.vlgmr.msra.gmra.mrb[0].mxu0 %v10531_v22  ;;  %v10597_v22 = vand.u32 4294901760, %v3638_v19 }
 0x1ab   : > { %3161 = vmatpush1.msra.mxu0 %v3160_v54  ;;  %3224 = vmatprep.mubr.f32.mxu0 %v10274_v2  ;;  %v3734_v32 = vand.u32 4294901760, %v3733_v1 }
 0x1ac   : > { %3241 = vmatprep.subr.mxu0 %v3240_v61  ;;  %v3714_v24 = vsub.f32 %v3638_v19, %v10597_v22 }
 0x1ae   : > { %v3715_v27 = vand.u32 4294901760, %v3714_v24 }
 0x1b0   : > { %v3716_v30 = vsub.f32 %v3714_v24, %v3715_v27 }
 0x1b2   : > { %3230 = vmatmul.mubr.f32.vlgmr.msra.gmra.mrb[0].mxu0 %v3229_v0  ;;  %v3717_v31 = vand.u32 4294901760, %v3716_v30 }
 0x1b3   : > { %3247 = vmatpush1.msra.mxu0 %v3246_v4  ;;  %3310 = vmatprep.mubr.f32.mxu0 %v10274_v2 }
 0x1b4   : > { %3320 = vmatprep.subr.mxu0 %v3237_v52  ;;  %v4126_v52 = vsel %vm252_vm0, %v206_v51, 0  ;;  %v209_v51 = vld [vmem:[%s10914_s2] sm:$0xf] }
 0x1ba   : > { %3312 = vmatmul.mubr.f32.vlgmr.msra.gmra.mrb[0].mxu0 %v10563_v53 }
 0x1bb   : > { %3323 = vmatpush1.msra.mxu0 %v3243_v57  ;;  %3386 = vmatprep.mubr.f32.mxu0 %v10274_v2 }
 0x1bc   : > { %3396 = vmatprep.subr.mxu0 %v3158_v46 }
 0x1c2   : > { %3389 = vmatmul.mubr.f32.vlgmr.msra.gmra.mrb[0].mxu0 %v3226_v56 }
 0x1c3   : > { %3398 = vmatpush1.msra.mxu0 %v3160_v54  ;;  %3461 = vmatprep.mubr.f32.mxu0 %v10274_v2 }
 0x1c4   : > { %3474 = vmatprep.subr.mxu0 %v3238_v55  ;;  %v10631_v55 = vand.u32 4294901760, %v4126_v52 }
 0x1c6   : > { %v4202_v58 = vsub.f32 %v4126_v52, %v10631_v55  ;;  %v5100_v52 = vsel %vm252_vm0, %v209_v51, 0 }
 0x1c8   : > { %v4203_v61 = vand.u32 4294901760, %v4202_v58 }
 0x1ca   : > { %3465 = vmatmul.mubr.f32.vlgmr.msra.gmra.mrb[0].mxu0 %v3227_v59  ;;  %v4204_v0 = vsub.f32 %v4202_v58, %v4203_v61 }
 0x1cb   : > { %3478 = vmatpush1.msra.mxu0 %v3244_v60  ;;  %3541 = vmatprep.mubr.f32.mxu0 %v10274_v2 }
 0x1cc   : > { %3550 = vmatprep.subr.mxu0 %v3158_v46  ;;  %v4132_v46 = vsel %vm256_vm2, %v4124_v43, 0  ;;  %v4205_v6 = vand.u32 4294901760, %v4204_v0 }
 0x1cd   : > { %v4134_v48 = vand.u32 4294901760, %v4132_v46 }
 0x1d2   : > { %3543 = vmatmul.mubr.f32.vlgmr.msra.gmra.mrb[0].mxu0 %v10563_v53 }
 0x1d3   : > { %3552 = vmatpush1.msra.mxu0 %v3160_v54  ;;  %3615 = vmatprep.mubr.f32.mxu0 %v10274_v2  ;;  %v4213_v54 = vsub.f32 %v4132_v46, %v4134_v48 }
 0x1d4   : > { %3647 = vmatprep.subr.mxu0 %v3646_v16 }
 0x1d5   : > { %v4214_v57 = vand.u32 4294901760, %v4213_v54 }
 0x1d7   : > { %v4215_v60 = vsub.f32 %v4213_v54, %v4214_v57 }
 0x1d9   : > { %v4216_v63 = vand.u32 4294901760, %v4215_v60 }
 0x1da   : > { %3617 = vmatmul.mubr.f32.vlgmr.msra.gmra.mrb[0].mxu0 %v10563_v53  ;;  %v4129_v53 = vsel %vm256_vm2, %v4123_v47, 0 }
 0x1db   : > { %3649 = vmatpush1.msra.mxu0 %v3648_v23  ;;  %3712 = vmatprep.mubr.f32.mxu0 %v10274_v2  ;;  %v4136_v56 = vand.u32 4294901760, %v4129_v53 }
 0x1dc   : > { %3729 = vmatprep.subr.mxu0 %v3728_v29 }
 0x1dd   : > { %v4219_v59 = vsub.f32 %v4129_v53, %v4136_v56  ;;  %v5175_v53 = vand.u32 4294901760, %v5100_v52 }
 0x1df   : > { %v4220_v62 = vand.u32 4294901760, %v4219_v59 }
 0x1e1   : > { %v4221_v4 = vsub.f32 %v4219_v59, %v4220_v62 }
 0x1e2   : > { %3718 = vmatmul.mubr.f32.vlgmr.msra.gmra.mrb[0].mxu0 %v3717_v31 }
 0x1e3   : > { %3735 = vmatpush1.msra.mxu0 %v3734_v32  ;;  %3798 = vmatprep.mubr.f32.mxu0 %v10274_v2  ;;  %v4222_v7 = vand.u32 4294901760, %v4221_v4 }
 0x1e4   : > { %3808 = vmatprep.subr.mxu0 %v3725_v21 }
 0x1ea   : > { %3800 = vmatmul.mubr.f32.vlgmr.msra.gmra.mrb[0].mxu0 %v10597_v22 }
 0x1eb   : > { %3811 = vmatpush1.msra.mxu0 %v3731_v25  ;;  %3874 = vmatprep.mubr.f32.mxu0 %v10274_v2 }
 0x1ec   : > { %3884 = vmatprep.subr.mxu0 %v3646_v16 }
 0x1f2   : > { %3877 = vmatmul.mubr.f32.vlgmr.msra.gmra.mrb[0].mxu0 %v3714_v24 }
 0x1f3   : > { %3886 = vmatpush1.msra.mxu0 %v3648_v23  ;;  %3949 = vmatprep.mubr.f32.mxu0 %v10274_v2 }
 0x1f4   : > { %3962 = vmatprep.subr.mxu0 %v3726_v3  ;;  %v4617_v3 = vsel %vm256_vm2, %v4611_v20, 0 }
 0x1f5   : > { %v4624_v26 = vand.u32 4294901760, %v4617_v3 }
 0x1f7   : > { %v4707_v29 = vsub.f32 %v4617_v3, %v4624_v26 }
 0x1f9   : > { %v4708_v31 = vand.u32 4294901760, %v4707_v29 }
 0x1fa   : > { %3953 = vmatmul.mubr.f32.vlgmr.msra.gmra.mrb[0].mxu0 %v3715_v27 }
 0x1fb   : > { %3966 = vmatpush1.msra.mxu0 %v3732_v28  ;;  %4029 = vmatprep.mubr.f32.mxu0 %v10274_v2  ;;  %v4709_v38 = vsub.f32 %v4707_v29, %v4708_v31 }
 0x1fc   : > { %4038 = vmatprep.subr.mxu0 %v3646_v16  ;;  %v4612_v16 = vmul.f32 %v10649_v14, %v4607_v15 }
 0x1fd   : > { %v4710_v43 = vand.u32 4294901760, %v4709_v38 }
 0x1fe   : > { %v4620_v19 = vsel %vm256_vm2, %v4612_v16, 0 }
 0x1ff   : > { %v4622_v21 = vand.u32 4294901760, %v4620_v19 }
 0x201   : > { %v4701_v24 = vsub.f32 %v4620_v19, %v4622_v21 }
 0x202   : > { %4031 = vmatmul.mubr.f32.vlgmr.msra.gmra.mrb[0].mxu0 %v10597_v22 }
 0x203   : > { %4040 = vmatpush1.msra.mxu0 %v3648_v23  ;;  %4103 = vmatprep.mubr.f32.mxu0 %v10274_v2  ;;  %v4702_v27 = vand.u32 4294901760, %v4701_v24 }
 0x204   : > { %4135 = vmatprep.subr.mxu0 %v4134_v48 }
 0x205   : > { %v4703_v30 = vsub.f32 %v4701_v24, %v4702_v27 }
 0x207   : > { %v4704_v32 = vand.u32 4294901760, %v4703_v30 }
 0x20a   : > { %4105 = vmatmul.mubr.f32.vlgmr.msra.gmra.mrb[0].mxu0 %v10597_v22  ;;  %v207_v22 = vld [vmem:[%s10913_s1 + $0x20] sm:$0xf] }
 0x20b   : > { %4137 = vmatpush1.msra.mxu0 %v4136_v56  ;;  %4200 = vmatprep.mubr.f32.mxu0 %v10274_v2  ;;  %v4614_v23 = vsel %vm252_vm0, %v207_v22, 0  ;;  %v218_v22 = vld [vmem:[%s10914_s2 + $0x24] sm:$0xf] }
 0x20c   : > { %4217 = vmatprep.subr.mxu0 %v4216_v63  ;;  %v4689_v25 = vand.u32 4294901760, %v4614_v23 }
 0x20e   : > { %v4690_v28 = vsub.f32 %v4614_v23, %v4689_v25  ;;  %v5574_v23 = vsel %vm252_vm0, %v218_v22, 0 }
 0x20f   : > { %v5643_v3 = vand.u32 4294901760, %v5574_v23 }
 0x210   : > { %v4691_v1 = vand.u32 4294901760, %v4690_v28 }
 0x212   : > { %4206 = vmatmul.mubr.f32.vlgmr.msra.gmra.mrb[0].mxu0 %v4205_v6  ;;  %v4692_v35 = vsub.f32 %v4690_v28, %v4691_v1 }
 0x213   : > { %4223 = vmatpush1.msra.mxu0 %v4222_v7  ;;  %4286 = vmatprep.mubr.f32.mxu0 %v10274_v2 }
 0x214   : > { %4296 = vmatprep.subr.mxu0 %v4213_v54  ;;  %v4693_v42 = vand.u32 4294901760, %v4692_v35  ;;  %v5176_v54 = vsub.f32 %v5100_v52, %v5175_v53 }
 0x21a   : > { %4288 = vmatmul.mubr.f32.vlgmr.msra.gmra.mrb[0].mxu0 %v10631_v55 }
 0x21b   : > { %4299 = vmatpush1.msra.mxu0 %v4219_v59  ;;  %4362 = vmatprep.mubr.f32.mxu0 %v10274_v2 }
 0x21c   : > { %4372 = vmatprep.subr.mxu0 %v4134_v48 }
 0x222   : > { %4365 = vmatmul.mubr.f32.vlgmr.msra.gmra.mrb[0].mxu0 %v4202_v58 }
 0x223   : > { %4374 = vmatpush1.msra.mxu0 %v4136_v56  ;;  %4437 = vmatprep.mubr.f32.mxu0 %v10274_v2 }
 0x224   : > { %4450 = vmatprep.subr.mxu0 %v4214_v57 }
 0x22a   : > { %4441 = vmatmul.mubr.f32.vlgmr.msra.gmra.mrb[0].mxu0 %v4203_v61  ;;  %v10261_v61 = vld [vmem:[%s10915_s3] sm:$0xff] }
 0x22b   : > { %4454 = vmatpush1.msra.mxu0 %v4220_v62  ;;  %4517 = vmatprep.mubr.f32.mxu0 %v10274_v2 }
 0x22c   : > { %4526 = vmatprep.subr.mxu0 %v4134_v48 }
 0x232   : > { %4519 = vmatmul.mubr.f32.vlgmr.msra.gmra.mrb[0].mxu0 %v10631_v55 }
 0x233   : > { %4528 = vmatpush1.msra.mxu0 %v4136_v56  ;;  %4591 = vmatprep.mubr.f32.mxu0 %v10274_v2 }
 0x234   : > { %4623 = vmatprep.subr.mxu0 %v4622_v21 }
 0x23a   : > { %4593 = vmatmul.mubr.f32.vlgmr.msra.gmra.mrb[0].mxu0 %v10631_v55  ;;  %v5177_v55 = vand.u32 4294901760, %v5176_v54 }
 0x23b   : > { %4625 = vmatpush1.msra.mxu0 %v4624_v26  ;;  %4688 = vmatprep.mubr.f32.mxu0 %v10274_v2 }
 0x23c   : > { %4705 = vmatprep.subr.mxu0 %v4704_v32  ;;  %v5178_v60 = vsub.f32 %v5176_v54, %v5177_v55 }
 0x23e   : > { %v5179_v11 = vand.u32 4294901760, %v5178_v60 }
 0x242   : > { %4694 = vmatmul.mubr.f32.vlgmr.msra.gmra.mrb[0].mxu0 %v4693_v42 }
 0x243   : > { %4711 = vmatpush1.msra.mxu0 %v4710_v43  ;;  %4774 = vmatprep.mubr.f32.mxu0 %v10274_v2 }
 0x244   : > { %4784 = vmatprep.subr.mxu0 %v4701_v24  ;;  %v5644_v24 = vsub.f32 %v5574_v23, %v5643_v3 }
 0x24a   : > { %4776 = vmatmul.mubr.f32.vlgmr.msra.gmra.mrb[0].mxu0 %v4689_v25 }
 0x24b   : > { %4787 = vmatpush1.msra.mxu0 %v4707_v29  ;;  %4850 = vmatprep.mubr.f32.mxu0 %v10274_v2 }
 0x24c   : > { %4860 = vmatprep.subr.mxu0 %v4622_v21 }
 0x252   : > { %4853 = vmatmul.mubr.f32.vlgmr.msra.gmra.mrb[0].mxu0 %v4690_v28 }
 0x253   : > { %4862 = vmatpush1.msra.mxu0 %v4624_v26  ;;  %4925 = vmatprep.mubr.f32.mxu0 %v10274_v2 }
 0x254   : > { %4938 = vmatprep.subr.mxu0 %v4702_v27 }
 0x25a   : > { %4929 = vmatmul.mubr.f32.vlgmr.msra.gmra.mrb[0].mxu0 %v4691_v1 }
 0x25b   : > { %4942 = vmatpush1.msra.mxu0 %v4708_v31  ;;  %5005 = vmatprep.mubr.f32.mxu0 %v10274_v2  ;;  %v210_v31 = vld [vmem:[%s10914_s2 + $0x4] sm:$0xf] }
 0x25c   : > { %5014 = vmatprep.subr.mxu0 %v4622_v21  ;;  %v6050_v38 = vsel %vm252_vm0, %v210_v31, 0 }
 0x262   : > { %5007 = vmatmul.mubr.f32.vlgmr.msra.gmra.mrb[0].mxu0 %v4689_v25 }
 0x263   : > { %5016 = vmatpush1.msra.mxu0 %v4624_v26  ;;  %5079 = vmatprep.mubr.f32.mxu0 %v10274_v2 }
 0x26a   : > { %5081 = vmatmul.mubr.f32.vlgmr.msra.gmra.mrb[0].mxu0 %v4689_v25  ;;  %v5645_v25 = vand.u32 4294901760, %v5644_v24 }
 0x26c   : > { %v5646_v26 = vsub.f32 %v5644_v24, %v5645_v25 }
 0x26e   : > { %v5647_v27 = vand.u32 4294901760, %v5646_v26 }
 0x33d   : > { %v5082_v45 = vpop.f32.mrb[0].mxu0 }
 0x33e   : > { %v10674_v46 = vmax.f32 %v5082_v45, 0.0  ;;  %v5084_v47 = vpop.f32.mrb[1].mxu0  ;;  %v6125_v45 = vand.u32 4294901760, %v6050_v38 }
 0x33f   : > { %v10676_v48 = vmax.f32 %v5084_v47, 0.0 }
 0x340   : > { %5091 = vrot.lane.b32.xlu0 %v10674_v46, %s10275_s21  ;;  %v6126_v52 = vsub.f32 %v6050_v38, %v6125_v45 }
 0x341   : > { %5093 = vrot.lane.b32.xlu1 %v10676_v48, %s10275_s21 }
 0x344   : > { %6041 = vrot.lane.b32.xlu0 %v10674_v46, %s10276_s22 }
 0x345   : > { %6043 = vrot.lane.b32.xlu1 %v10676_v48, %s10276_s22 }
 0x348   : > { %6525 = vrot.lane.b32.xlu0 %v10674_v46, %s10277_s23 }
 0x349   : > { %6527 = vrot.lane.b32.xlu1 %v10676_v48, %s10277_s23 }
 0x34c   : > { %7009 = vrot.lane.b32.xlu0 %v10674_v46, %s10278_s24 }
 0x34d   : > { %7011 = vrot.lane.b32.xlu1 %v10676_v48, %s10278_s24 }
 0x350   : > { %7969 = vrot.lane.b32.xlu0 %v10674_v46, %s10280_s5 }
 0x351   : > { %7971 = vrot.lane.b32.xlu1 %v10676_v48, %s10280_s5 }
 0x354   : > { %8453 = vrot.lane.b32.xlu0 %v10674_v46, %s10282_s10 }
 0x355   : > { %8455 = vrot.lane.b32.xlu1 %v10676_v48, %s10282_s10 }
 0x358   : > { %8937 = vrot.lane.b32.xlu0 %v10674_v46, %s10283_s18 }
 0x359   : > { %8939 = vrot.lane.b32.xlu1 %v10676_v48, %s10283_s18 }
 0x35c   : > { %9421 = vrot.lane.b32.xlu0 %v10674_v46, %s10284_s28 }
 0x35d   : > { %9423 = vrot.lane.b32.xlu1 %v10676_v48, %s10284_s28 }
 0x3b2   : > { %v5092_v56 = vpop.permute.xlu0 %5091 }
 0x3b3   : > { %v5094_v57 = vpop.permute.xlu1 %5093 }
 0x3b4   : > { %v5095_v58 = vsel %vm244_vm1, %v5092_v56, %v5094_v57  ;;  %v5096_v59 = vsel %vm244_vm1, %v5094_v57, %v5092_v56 }
 0x3b5   : > { %v5097_v62 = vmul.f32 %v10261_v61, %v5096_v59  ;;  %v5098_v63 = vmul.f32 %v5095_v58, %v10366_v13 }
 0x3b6   : > { %v6042_v28 = vpop.permute.xlu0 %6041 }
 0x3b7   : > { %v5103_v0 = vsel %vm256_vm2, %v5097_v62, 0  ;;  %v5106_v4 = vsel %vm256_vm2, %v5098_v63, 0  ;;  %v6044_v29 = vpop.permute.xlu1 %6043 }
 0x3b8   : > { %v5108_v6 = vand.u32 4294901760, %v5106_v4  ;;  %v5110_v7 = vand.u32 4294901760, %v5103_v0  ;;  %v6045_v30 = vsel %vm1203_vm3, %v6042_v28, %v6044_v29 }
 0x3ba   : > { %v5187_v12 = vsub.f32 %v5106_v4, %v5108_v6  ;;  %v5193_v15 = vsub.f32 %v5103_v0, %v5110_v7  ;;  %5109 = vmatprep.subr.mxu1 %v5108_v6 }
 0x3bb   : > { %5111 = vmatpush1.msra.mxu1 %v5110_v7  ;;  %v6528_v61 = vpop.permute.xlu1 %6527 }
 0x3bc   : > { %5180 = vmatmul.mubr.f32.vlgmr.msra.gmra.mrb[0].mxu1 %v5179_v11  ;;  %v5188_v16 = vand.u32 4294901760, %v5187_v12  ;;  %v5194_v17 = vand.u32 4294901760, %v5193_v15 }
 0x3bd   : > { %5260 = vmatprep.mubr.f32.mxu1 %v10274_v2 }
 0x3be   : > { %v5189_v19 = vsub.f32 %v5187_v12, %v5188_v16  ;;  %v5195_v20 = vsub.f32 %v5193_v15, %v5194_v17 }
 0x3c0   : > { %v5190_v21 = vand.u32 4294901760, %v5189_v19  ;;  %v5196_v13 = vand.u32 4294901760, %v5195_v20 }
 0x3c2   : > { %5191 = vmatprep.subr.mxu1 %v5190_v21 }
 0x3c3   : > { %5197 = vmatpush1.msra.mxu1 %v5196_v13 }
 0x3c4   : > { %5262 = vmatmul.mubr.f32.vlgmr.msra.gmra.mrb[0].mxu1 %v5175_v53  ;;  %5270 = vmatprep.subr.mxu1 %v5187_v12 }
 0x3c5   : > { %5273 = vmatpush1.msra.mxu1 %v5193_v15  ;;  %5336 = vmatprep.mubr.f32.mxu1 %v10274_v2 }
 0x3c6   : > { %5346 = vmatprep.subr.mxu1 %v5108_v6 }
 0x3cc   : > { %5339 = vmatmul.mubr.f32.vlgmr.msra.gmra.mrb[0].mxu1 %v5176_v54  ;;  %v6127_v54 = vand.u32 4294901760, %v6126_v52 }
 0x3cd   : > { %5348 = vmatpush1.msra.mxu1 %v5110_v7  ;;  %5411 = vmatprep.mubr.f32.mxu1 %v10274_v2 }
 0x3ce   : > { %5424 = vmatprep.subr.mxu1 %v5188_v16  ;;  %v6128_v57 = vsub.f32 %v6126_v52, %v6127_v54 }
 0x3d0   : > { %v6129_v59 = vand.u32 4294901760, %v6128_v57 }
 0x3d4   : > { %5415 = vmatmul.mubr.f32.vlgmr.msra.gmra.mrb[0].mxu1 %v5177_v55 }
 0x3d5   : > { %5428 = vmatpush1.msra.mxu1 %v5194_v17  ;;  %5491 = vmatprep.mubr.f32.mxu1 %v10274_v2 }
 0x3d6   : > { %5500 = vmatprep.subr.mxu1 %v5108_v6  ;;  %v211_v6 = vld [vmem:[%s10914_s2 + $0x8] sm:$0xf] }
 0x3dc   : > { %5493 = vmatmul.mubr.f32.vlgmr.msra.gmra.mrb[0].mxu1 %v5175_v53 }
 0x3dd   : > { %5502 = vmatpush1.msra.mxu1 %v5110_v7  ;;  %5565 = vmatprep.mubr.f32.mxu1 %v10274_v2  ;;  %v10263_v7 = vld [vmem:[%s10915_s3 + $0x10] sm:$0xff] }
 0x3de   : > { %9988 = vmatprep.subr.msk.mxu1 %vm256_vm2, %v10281_v41 }
 0x3e4   : > { %5567 = vmatmul.mubr.f32.vlgmr.msra.gmra.mrb[0].mxu1 %v5175_v53 }
 0x3e5   : > { %9989 = vmatpush1.msk.msra.mxu1 %vm256_vm2, %v10281_v41  ;;  %5642 = vmatprep.mubr.f32.mxu1 %v10274_v2 }
 0x3e6   : > { %5659 = vmatprep.subr.mxu1 %v10403_v44 }
 0x3ec   : > { %5648 = vmatmul.mubr.f32.vlgmr.msra.gmra.mrb[0].mxu1 %v5647_v27 }
 0x3ed   : > { %5665 = vmatpush1.msra.mxu1 %v10403_v44  ;;  %5728 = vmatprep.mubr.f32.mxu1 %v10274_v2  ;;  %v6048_v44 = vmul.f32 %v6045_v30, %v10422_v50  ;;  %v10262_v50 = vld [vmem:[%s10915_s3 + $0x8] sm:$0xff]  ;;  %v7012_v30 = vpop.permute.xlu1 %7011 }
 0x3ee   : > { %5738 = vmatprep.subr.mxu1 %v10385_v37 }
 0x3ef   : > { %v6056_v1 = vsel %vm256_vm2, %v6048_v44, 0 }
 0x3f0   : > { %v6058_v35 = vand.u32 4294901760, %v6056_v1 }
 0x3f2   : > { %v6137_v43 = vsub.f32 %v6056_v1, %v6058_v35 }
 0x3f4   : > { %5730 = vmatmul.mubr.f32.vlgmr.msra.gmra.mrb[0].mxu1 %v5643_v3  ;;  %v6138_v51 = vand.u32 4294901760, %v6137_v43 }
 0x3f5   : > { %5741 = vmatpush1.msra.mxu1 %v10385_v37  ;;  %5804 = vmatprep.mubr.f32.mxu1 %v10274_v2  ;;  %v6046_v37 = vsel %vm1203_vm3, %v6044_v29, %v6042_v28 }
 0x3f6   : > { %9990 = vmatprep.subr.msk.mxu1 %vm256_vm2, %v10281_v41  ;;  %v6047_v32 = vmul.f32 %v10262_v50, %v6046_v37  ;;  %v6139_v53 = vsub.f32 %v6137_v43, %v6138_v51  ;;  %v212_v50 = vld [vmem:[%s10914_s2 + $0xc] sm:$0xf] }
 0x3f8   : > { %v6053_v42 = vsel %vm256_vm2, %v6047_v32, 0  ;;  %v6140_v56 = vand.u32 4294901760, %v6139_v53  ;;  %v10264_v32 = vld [vmem:[%s10915_s3 + $0x18] sm:$0xff] }
 0x3f9   : > { %v6060_v47 = vand.u32 4294901760, %v6053_v42 }
 0x3fc   : > { %5807 = vmatmul.mubr.f32.vlgmr.msra.gmra.mrb[0].mxu1 %v5644_v24 }
 0x3fd   : > { %9991 = vmatpush1.msk.msra.mxu1 %vm256_vm2, %v10281_v41  ;;  %5879 = vmatprep.mubr.f32.mxu1 %v10274_v2 }
 0x3fe   : > { %5892 = vmatprep.subr.mxu1 %v10394_v39 }
 0x404   : > { %5883 = vmatmul.mubr.f32.vlgmr.msra.gmra.mrb[0].mxu1 %v5645_v25 }
 0x405   : > { %5896 = vmatpush1.msra.mxu1 %v10394_v39  ;;  %5959 = vmatprep.mubr.f32.mxu1 %v10274_v2  ;;  %v6143_v39 = vsub.f32 %v6053_v42, %v6060_v47 }
 0x406   : > { %9992 = vmatprep.subr.msk.mxu1 %vm256_vm2, %v10281_v41 }
 0x407   : > { %v6144_v55 = vand.u32 4294901760, %v6143_v39 }
 0x409   : > { %v6145_v58 = vsub.f32 %v6143_v39, %v6144_v55 }
 0x40b   : > { %v6146_v60 = vand.u32 4294901760, %v6145_v58 }
 0x40c   : > { %5961 = vmatmul.mubr.f32.vlgmr.msra.gmra.mrb[0].mxu1 %v5643_v3 }
 0x40d   : > { %9993 = vmatpush1.msk.msra.mxu1 %vm256_vm2, %v10281_v41  ;;  %6033 = vmatprep.mubr.f32.mxu1 %v10274_v2  ;;  %v6526_v41 = vpop.permute.xlu0 %6525 }
 0x40e   : > { %6059 = vmatprep.subr.mxu1 %v6058_v35  ;;  %v6529_v62 = vsel %vm1691_vm4, %v6526_v41, %v6528_v61  ;;  %v6530_v0 = vsel %vm1691_vm4, %v6528_v61, %v6526_v41  ;;  %v7500_v41 = vsel %vm256_vm2, %v10676_v48, 0  ;;  %v213_v61 = vld [vmem:[%s10914_s2 + $0x10] sm:$0xf] }
 0x40f   : > { %v6532_v63 = vmul.f32 %v6529_v62, %v10463_v18  ;;  %v6531_v11 = vmul.f32 %v10263_v7, %v6530_v0  ;;  %v6534_v18 = vsel %vm252_vm0, %v211_v6, 0  ;;  %v7502_v62 = vand.u32 4294901760, %v7500_v41 }
 0x410   : > { %v6609_v17 = vand.u32 4294901760, %v6534_v18  ;;  %v7497_v0 = vsel %vm256_vm2, %v10674_v46, 0 }
 0x411   : > { %v6540_v4 = vsel %vm256_vm2, %v6532_v63, 0  ;;  %v6537_v15 = vsel %vm256_vm2, %v6531_v11, 0  ;;  %v7010_v29 = vpop.permute.xlu0 %7009  ;;  %v7494_v63 = vsel %vm252_vm0, %v213_v61, 0  ;;  %v7504_v7 = vand.u32 4294901760, %v7497_v0 }
 0x412   : > { %v6542_v12 = vand.u32 4294901760, %v6540_v4  ;;  %v6544_v19 = vand.u32 4294901760, %v6537_v15  ;;  %v6610_v21 = vsub.f32 %v6534_v18, %v6609_v17  ;;  %v7013_v44 = vsel %vm2179_vm5, %v7010_v29, %v7012_v30 }
 0x413   : > { %v7016_v37 = vmul.f32 %v7013_v44, %v10496_v49  ;;  %v7014_v1 = vsel %vm2179_vm5, %v7012_v30, %v7010_v29  ;;  %v7018_v49 = vsel %vm252_vm0, %v212_v50, 0  ;;  %v7569_v6 = vand.u32 4294901760, %v7494_v63 }
 0x414   : > { %6035 = vmatmul.mubr.f32.vlgmr.msra.gmra.mrb[0].mxu1 %v5643_v3  ;;  %v6621_v16 = vsub.f32 %v6540_v4, %v6542_v12  ;;  %v6627_v13 = vsub.f32 %v6537_v15, %v6544_v19  ;;  %v6611_v23 = vand.u32 4294901760, %v6610_v21  ;;  %v7581_v4 = vsub.f32 %v7500_v41, %v7502_v62 }
 0x415   : > { %6061 = vmatpush1.msra.mxu1 %v6060_v47  ;;  %6124 = vmatprep.mubr.f32.mxu1 %v10274_v2  ;;  %v7024_v31 = vsel %vm256_vm2, %v7016_v37, 0  ;;  %v7570_v11 = vsub.f32 %v7494_v63, %v7569_v6 }
 0x416   : > { %6141 = vmatprep.subr.mxu1 %v6140_v56  ;;  %v6622_v20 = vand.u32 4294901760, %v6621_v16  ;;  %v6628_v3 = vand.u32 4294901760, %v6627_v13  ;;  %v6612_v25 = vsub.f32 %v6610_v21, %v6611_v23  ;;  %v7026_v38 = vand.u32 4294901760, %v7024_v31 }
 0x417   : > { %v7582_v48 = vand.u32 4294901760, %v7581_v4  ;;  %v7571_v15 = vand.u32 4294901760, %v7570_v11 }
 0x418   : > { %v6623_v22 = vsub.f32 %v6621_v16, %v6622_v20  ;;  %v6629_v26 = vsub.f32 %v6627_v13, %v6628_v3  ;;  %v6613_v27 = vand.u32 4294901760, %v6612_v25 }
 0x419   : > { %v7583_v18 = vsub.f32 %v7581_v4, %v7582_v48 }
 0x41a   : > { %v6624_v24 = vand.u32 4294901760, %v6623_v22  ;;  %v6630_v28 = vand.u32 4294901760, %v6629_v26  ;;  %v7972_v22 = vpop.permute.xlu1 %7971  ;;  %v214_v26 = vld [vmem:[%s10914_s2 + $0x14] sm:$0xf] }
 0x41c   : > { %6130 = vmatmul.mubr.f32.vlgmr.msra.gmra.mrb[0].mxu1 %v6129_v59 }
 0x41d   : > { %6147 = vmatpush1.msra.mxu1 %v6146_v60  ;;  %6210 = vmatprep.mubr.f32.mxu1 %v10274_v2 }
 0x41e   : > { %6220 = vmatprep.subr.mxu1 %v6137_v43  ;;  %v7105_v43 = vsub.f32 %v7024_v31, %v7026_v38 }
 0x424   : > { %6212 = vmatmul.mubr.f32.vlgmr.msra.gmra.mrb[0].mxu1 %v6125_v45 }
 0x425   : > { %6223 = vmatpush1.msra.mxu1 %v6143_v39  ;;  %6286 = vmatprep.mubr.f32.mxu1 %v10274_v2 }
 0x426   : > { %6296 = vmatprep.subr.mxu1 %v6058_v35 }
 0x42c   : > { %6289 = vmatmul.mubr.f32.vlgmr.msra.gmra.mrb[0].mxu1 %v6126_v52 }
 0x42d   : > { %6298 = vmatpush1.msra.mxu1 %v6060_v47  ;;  %6361 = vmatprep.mubr.f32.mxu1 %v10274_v2 }
 0x42e   : > { %6374 = vmatprep.subr.mxu1 %v6138_v51  ;;  %v7106_v51 = vand.u32 4294901760, %v7105_v43 }
 0x430   : > { %v7107_v53 = vsub.f32 %v7105_v43, %v7106_v51 }
 0x432   : > { %v7108_v56 = vand.u32 4294901760, %v7107_v53 }
 0x434   : > { %6365 = vmatmul.mubr.f32.vlgmr.msra.gmra.mrb[0].mxu1 %v6127_v54 }
 0x435   : > { %6378 = vmatpush1.msra.mxu1 %v6144_v55  ;;  %6441 = vmatprep.mubr.f32.mxu1 %v10274_v2 }
 0x436   : > { %6450 = vmatprep.subr.mxu1 %v6058_v35  ;;  %v7015_v35 = vmul.f32 %v10264_v32, %v7014_v1 }
 0x438   : > { %v7021_v42 = vsel %vm256_vm2, %v7015_v35, 0 }
 0x43c   : > { %6443 = vmatmul.mubr.f32.vlgmr.msra.gmra.mrb[0].mxu1 %v6125_v45 }
 0x43d   : > { %6452 = vmatpush1.msra.mxu1 %v6060_v47  ;;  %6515 = vmatprep.mubr.f32.mxu1 %v10274_v2  ;;  %v7028_v47 = vand.u32 4294901760, %v7021_v42 }
 0x43e   : > { %6543 = vmatprep.subr.mxu1 %v6542_v12 }
 0x43f   : > { %v7111_v39 = vsub.f32 %v7021_v42, %v7028_v47 }
 0x441   : > { %v7112_v55 = vand.u32 4294901760, %v7111_v39 }
 0x443   : > { %v7113_v58 = vsub.f32 %v7111_v39, %v7112_v55 }
 0x444   : > { %6517 = vmatmul.mubr.f32.vlgmr.msra.gmra.mrb[0].mxu1 %v6125_v45  ;;  %v7093_v45 = vand.u32 4294901760, %v7018_v49 }
 0x445   : > { %6545 = vmatpush1.msra.mxu1 %v6544_v19  ;;  %6608 = vmatprep.mubr.f32.mxu1 %v10274_v2  ;;  %v7114_v60 = vand.u32 4294901760, %v7113_v58 }
 0x446   : > { %6625 = vmatprep.subr.mxu1 %v6624_v24  ;;  %v7094_v52 = vsub.f32 %v7018_v49, %v7093_v45 }
 0x448   : > { %v7095_v54 = vand.u32 4294901760, %v7094_v52 }
 0x44a   : > { %v7096_v57 = vsub.f32 %v7094_v52, %v7095_v54 }
 0x44c   : > { %6614 = vmatmul.mubr.f32.vlgmr.msra.gmra.mrb[0].mxu1 %v6613_v27  ;;  %v7097_v59 = vand.u32 4294901760, %v7096_v57 }
 0x44d   : > { %6631 = vmatpush1.msra.mxu1 %v6630_v28  ;;  %6694 = vmatprep.mubr.f32.mxu1 %v10274_v2 }
 0x44e   : > { %6704 = vmatprep.subr.mxu1 %v6621_v16 }
 0x454   : > { %6696 = vmatmul.mubr.f32.vlgmr.msra.gmra.mrb[0].mxu1 %v6609_v17 }
 0x455   : > { %6707 = vmatpush1.msra.mxu1 %v6627_v13  ;;  %6770 = vmatprep.mubr.f32.mxu1 %v10274_v2  ;;  %v7970_v13 = vpop.permute.xlu0 %7969 }
 0x456   : > { %6780 = vmatprep.subr.mxu1 %v6542_v12  ;;  %v7973_v24 = vsel %vm3141_vm6, %v7970_v13, %v7972_v22 }
 0x457   : > { %v7975_v27 = vmul.f32 %v10541_v33, %v7973_v24 }
 0x459   : > { %v7981_v29 = vsel %vm256_vm2, %v7975_v27, 0 }
 0x45a   : > { %v7988_v37 = vand.u32 4294901760, %v7981_v29 }
 0x45c   : > { %6773 = vmatmul.mubr.f32.vlgmr.msra.gmra.mrb[0].mxu1 %v6610_v21  ;;  %v8071_v33 = vsub.f32 %v7981_v29, %v7988_v37 }
 0x45d   : > { %6782 = vmatpush1.msra.mxu1 %v6544_v19  ;;  %6845 = vmatprep.mubr.f32.mxu1 %v10274_v2 }
 0x45e   : > { %6858 = vmatprep.subr.mxu1 %v6622_v20  ;;  %v8072_v35 = vand.u32 4294901760, %v8071_v33 }
 0x460   : > { %v8073_v42 = vsub.f32 %v8071_v33, %v8072_v35 }
 0x464   : > { %6849 = vmatmul.mubr.f32.vlgmr.msra.gmra.mrb[0].mxu1 %v6611_v23  ;;  %v7974_v23 = vsel %vm3141_vm6, %v7972_v22, %v7970_v13 }
 0x465   : > { %6862 = vmatpush1.msra.mxu1 %v6628_v3  ;;  %6925 = vmatprep.mubr.f32.mxu1 %v10274_v2  ;;  %v7976_v3 = vmul.f32 %v7974_v23, %v10547_v36  ;;  %v7978_v36 = vsel %vm252_vm0, %v214_v26, 0 }
 0x466   : > { %6934 = vmatprep.subr.mxu1 %v6542_v12  ;;  %v7587_v12 = vsub.f32 %v7497_v0, %v7504_v7  ;;  %v8053_v44 = vand.u32 4294901760, %v7978_v36 }
 0x467   : > { %v7984_v25 = vsel %vm256_vm2, %v7976_v3, 0 }
 0x468   : > { %v7588_v16 = vand.u32 4294901760, %v7587_v12  ;;  %v7986_v28 = vand.u32 4294901760, %v7984_v25  ;;  %v8054_v31 = vsub.f32 %v7978_v36, %v8053_v44 }
 0x46a   : > { %v7589_v46 = vsub.f32 %v7587_v12, %v7588_v16  ;;  %v8065_v30 = vsub.f32 %v7984_v25, %v7986_v28  ;;  %v8055_v32 = vand.u32 4294901760, %v8054_v31 }
 0x46c   : > { %6927 = vmatmul.mubr.f32.vlgmr.msra.gmra.mrb[0].mxu1 %v6609_v17  ;;  %v7590_v21 = vand.u32 4294901760, %v7589_v46  ;;  %v8066_v1 = vand.u32 4294901760, %v8065_v30  ;;  %v8056_v49 = vsub.f32 %v8054_v31, %v8055_v32 }
 0x46d   : > { %6936 = vmatpush1.msra.mxu1 %v6544_v19  ;;  %6999 = vmatprep.mubr.f32.mxu1 %v10274_v2  ;;  %v7572_v19 = vsub.f32 %v7570_v11, %v7571_v15 }
 0x46e   : > { %7027 = vmatprep.subr.mxu1 %v7026_v38  ;;  %v8067_v50 = vsub.f32 %v8065_v30, %v8066_v1 }
 0x46f   : > { %v7573_v20 = vand.u32 4294901760, %v7572_v19 }
 0x474   : > { %7001 = vmatmul.mubr.f32.vlgmr.msra.gmra.mrb[0].mxu1 %v6609_v17  ;;  %v7584_v17 = vand.u32 4294901760, %v7583_v18 }
 0x475   : > { %7029 = vmatpush1.msra.mxu1 %v7028_v47  ;;  %7092 = vmatprep.mubr.f32.mxu1 %v10274_v2 }
 0x476   : > { %7109 = vmatprep.subr.mxu1 %v7108_v56 }
 0x47c   : > { %7098 = vmatmul.mubr.f32.vlgmr.msra.gmra.mrb[0].mxu1 %v7097_v59 }
 0x47d   : > { %7115 = vmatpush1.msra.mxu1 %v7114_v60  ;;  %7178 = vmatprep.mubr.f32.mxu1 %v10274_v2 }
 0x47e   : > { %7188 = vmatprep.subr.mxu1 %v7105_v43  ;;  %v8057_v43 = vand.u32 4294901760, %v8056_v49  ;;  %v217_v49 = vld [vmem:[%s10914_s2 + $0x20] sm:$0xf] }
 0x484   : > { %7180 = vmatmul.mubr.f32.vlgmr.msra.gmra.mrb[0].mxu1 %v7093_v45 }
 0x485   : > { %7191 = vmatpush1.msra.mxu1 %v7111_v39  ;;  %7254 = vmatprep.mubr.f32.mxu1 %v10274_v2 }
 0x486   : > { %7264 = vmatprep.subr.mxu1 %v7026_v38 }
 0x48c   : > { %7257 = vmatmul.mubr.f32.vlgmr.msra.gmra.mrb[0].mxu1 %v7094_v52 }
 0x48d   : > { %7266 = vmatpush1.msra.mxu1 %v7028_v47  ;;  %7329 = vmatprep.mubr.f32.mxu1 %v10274_v2 }
 0x48e   : > { %7342 = vmatprep.subr.mxu1 %v7106_v51  ;;  %v8456_v51 = vpop.permute.xlu1 %8455 }
 0x494   : > { %7333 = vmatmul.mubr.f32.vlgmr.msra.gmra.mrb[0].mxu1 %v7095_v54 }
 0x495   : > { %7346 = vmatpush1.msra.mxu1 %v7112_v55  ;;  %7409 = vmatprep.mubr.f32.mxu1 %v10274_v2  ;;  %v215_v55 = vld [vmem:[%s10914_s2 + $0x18] sm:$0xf] }
 0x496   : > { %7418 = vmatprep.subr.mxu1 %v7026_v38  ;;  %v8068_v38 = vand.u32 4294901760, %v8067_v50 }
 0x49c   : > { %7411 = vmatmul.mubr.f32.vlgmr.msra.gmra.mrb[0].mxu1 %v7093_v45 }
 0x49d   : > { %7420 = vmatpush1.msra.mxu1 %v7028_v47  ;;  %7483 = vmatprep.mubr.f32.mxu1 %v10274_v2  ;;  %v8454_v47 = vpop.permute.xlu0 %8453 }
 0x49e   : > { %7503 = vmatprep.subr.mxu1 %v7502_v62  ;;  %v8458_v52 = vsel %vm3629_vm7, %v8456_v51, %v8454_v47  ;;  %v8457_v53 = vsel %vm3629_vm7, %v8454_v47, %v8456_v51 }
 0x49f   : > { %v8460_v39 = vmul.f32 %v8458_v52, %v10581_v8  ;;  %v8459_v56 = vmul.f32 %v10575_v5, %v8457_v53  ;;  %v8462_v8 = vsel %vm252_vm0, %v215_v55, 0 }
 0x4a0   : > { %v8537_v60 = vand.u32 4294901760, %v8462_v8 }
 0x4a1   : > { %v8468_v54 = vsel %vm256_vm2, %v8460_v39, 0  ;;  %v8465_v58 = vsel %vm256_vm2, %v8459_v56, 0  ;;  %v8938_v18 = vpop.permute.xlu0 %8937 }
 0x4a2   : > { %v8470_v57 = vand.u32 4294901760, %v8468_v54  ;;  %v8472_v41 = vand.u32 4294901760, %v8465_v58 }
 0x4a4   : > { %7485 = vmatmul.mubr.f32.vlgmr.msra.gmra.mrb[0].mxu1 %v7093_v45  ;;  %v8074_v45 = vand.u32 4294901760, %v8073_v42  ;;  %v8549_v59 = vsub.f32 %v8468_v54, %v8470_v57  ;;  %v8555_v5 = vsub.f32 %v8465_v58, %v8472_v41 }
 0x4a5   : > { %7505 = vmatpush1.msra.mxu1 %v7504_v7  ;;  %7568 = vmatprep.mubr.f32.mxu1 %v10274_v2 }
 0x4a6   : > { %7585 = vmatprep.subr.mxu1 %v7584_v17  ;;  %v8550_v61 = vand.u32 4294901760, %v8549_v59 }
 0x4a8   : > { %v8551_v63 = vsub.f32 %v8549_v59, %v8550_v61 }
 0x4ac   : > { %7574 = vmatmul.mubr.f32.vlgmr.msra.gmra.mrb[0].mxu1 %v7573_v20  ;;  %v216_v20 = vld [vmem:[%s10914_s2 + $0x1c] sm:$0xf] }
 0x4ad   : > { %7591 = vmatpush1.msra.mxu1 %v7590_v21  ;;  %7654 = vmatprep.mubr.f32.mxu1 %v10274_v2 }
 0x4ae   : > { %7664 = vmatprep.subr.mxu1 %v7581_v4  ;;  %v8556_v4 = vand.u32 4294901760, %v8555_v5 }
 0x4b4   : > { %7656 = vmatmul.mubr.f32.vlgmr.msra.gmra.mrb[0].mxu1 %v7569_v6 }
 0x4b5   : > { %7667 = vmatpush1.msra.mxu1 %v7587_v12  ;;  %7730 = vmatprep.mubr.f32.mxu1 %v10274_v2 }
 0x4b6   : > { %7740 = vmatprep.subr.mxu1 %v7502_v62 }
 0x4bc   : > { %7733 = vmatmul.mubr.f32.vlgmr.msra.gmra.mrb[0].mxu1 %v7570_v11 }
 0x4bd   : > { %7742 = vmatpush1.msra.mxu1 %v7504_v7  ;;  %7805 = vmatprep.mubr.f32.mxu1 %v10274_v2 }
 0x4be   : > { %7818 = vmatprep.subr.mxu1 %v7582_v48  ;;  %v8557_v48 = vsub.f32 %v8555_v5, %v8556_v4 }
 0x4c0   : > { %v8558_v12 = vand.u32 4294901760, %v8557_v48 }
 0x4c4   : > { %7809 = vmatmul.mubr.f32.vlgmr.msra.gmra.mrb[0].mxu1 %v7571_v15  ;;  %v8940_v15 = vpop.permute.xlu1 %8939 }
 0x4c5   : > { %7822 = vmatpush1.msra.mxu1 %v7588_v16  ;;  %7885 = vmatprep.mubr.f32.mxu1 %v10274_v2  ;;  %v8942_v16 = vsel %vm4117_vm8, %v8940_v15, %v8938_v18  ;;  %v8941_v19 = vsel %vm4117_vm8, %v8938_v18, %v8940_v15 }
 0x4c6   : > { %7894 = vmatprep.subr.mxu1 %v7502_v62  ;;  %v8538_v62 = vsub.f32 %v8462_v8, %v8537_v60  ;;  %v8944_v17 = vmul.f32 %v8942_v16, %v10615_v40  ;;  %v8943_v21 = vmul.f32 %v10609_v34, %v8941_v19  ;;  %v8946_v40 = vsel %vm252_vm0, %v216_v20, 0 }
 0x4c7   : > { %v9021_v3 = vand.u32 4294901760, %v8946_v40 }
 0x4c8   : > { %v8539_v0 = vand.u32 4294901760, %v8538_v62  ;;  %v8952_v46 = vsel %vm256_vm2, %v8944_v17, 0  ;;  %v8949_v22 = vsel %vm256_vm2, %v8943_v21, 0 }
 0x4c9   : > { %v8954_v13 = vand.u32 4294901760, %v8952_v46  ;;  %v8956_v24 = vand.u32 4294901760, %v8949_v22  ;;  %v9022_v26 = vsub.f32 %v8946_v40, %v9021_v3 }
 0x4cb   : > { %v9033_v23 = vsub.f32 %v8952_v46, %v8954_v13  ;;  %v9039_v34 = vsub.f32 %v8949_v22, %v8956_v24 }
 0x4cc   : > { %7887 = vmatmul.mubr.f32.vlgmr.msra.gmra.mrb[0].mxu1 %v7569_v6 }
 0x4cd   : > { %7896 = vmatpush1.msra.mxu1 %v7504_v7  ;;  %7959 = vmatprep.mubr.f32.mxu1 %v10274_v2  ;;  %v8540_v7 = vsub.f32 %v8538_v62, %v8539_v0  ;;  %v9034_v25 = vand.u32 4294901760, %v9033_v23  ;;  %v9040_v36 = vand.u32 4294901760, %v9039_v34 }
 0x4ce   : > { %7987 = vmatprep.subr.mxu1 %v7986_v28 }
 0x4cf   : > { %v8541_v11 = vand.u32 4294901760, %v8540_v7  ;;  %v9035_v27 = vsub.f32 %v9033_v23, %v9034_v25 }
 0x4d1   : > { %v9036_v29 = vand.u32 4294901760, %v9035_v27 }
 0x4d4   : > { %7961 = vmatmul.mubr.f32.vlgmr.msra.gmra.mrb[0].mxu1 %v7569_v6  ;;  %v8552_v6 = vand.u32 4294901760, %v8551_v63 }
 0x4d5   : > { %7989 = vmatpush1.msra.mxu1 %v7988_v37  ;;  %8052 = vmatprep.mubr.f32.mxu1 %v10274_v2 }
 0x4d6   : > { %8069 = vmatprep.subr.mxu1 %v8068_v38 }
 0x4dc   : > { %8058 = vmatmul.mubr.f32.vlgmr.msra.gmra.mrb[0].mxu1 %v8057_v43 }
 0x4dd   : > { %8075 = vmatpush1.msra.mxu1 %v8074_v45  ;;  %8138 = vmatprep.mubr.f32.mxu1 %v10274_v2 }
 0x4de   : > { %8148 = vmatprep.subr.mxu1 %v8065_v30 }
 0x4e4   : > { %8140 = vmatmul.mubr.f32.vlgmr.msra.gmra.mrb[0].mxu1 %v8053_v44 }
 0x4e5   : > { %8151 = vmatpush1.msra.mxu1 %v8071_v33  ;;  %8214 = vmatprep.mubr.f32.mxu1 %v10274_v2  ;;  %v9424_v33 = vpop.permute.xlu1 %9423 }
 0x4e6   : > { %8224 = vmatprep.subr.mxu1 %v7986_v28 }
 0x4ec   : > { %8217 = vmatmul.mubr.f32.vlgmr.msra.gmra.mrb[0].mxu1 %v8054_v31  ;;  %v9422_v31 = vpop.permute.xlu0 %9421 }
 0x4ed   : > { %8226 = vmatpush1.msra.mxu1 %v7988_v37  ;;  %8289 = vmatprep.mubr.f32.mxu1 %v10274_v2  ;;  %v9426_v50 = vsel %vm4605_vm9, %v9424_v33, %v9422_v31 }
 0x4ee   : > { %8302 = vmatprep.subr.mxu1 %v8066_v1 }
 0x4f4   : > { %8293 = vmatmul.mubr.f32.vlgmr.msra.gmra.mrb[0].mxu1 %v8055_v32  ;;  %v9428_v32 = vmul.f32 %v9426_v50, %v10649_v14  ;;  %v9430_v14 = vsel %vm252_vm0, %v217_v49, 0 }
 0x4f5   : > { %8306 = vmatpush1.msra.mxu1 %v8072_v35  ;;  %8369 = vmatprep.mubr.f32.mxu1 %v10274_v2  ;;  %v9425_v35 = vsel %vm4605_vm9, %v9422_v31, %v9424_v33  ;;  %v9505_v47 = vand.u32 4294901760, %v9430_v14 }
 0x4f6   : > { %8378 = vmatprep.subr.mxu1 %v7986_v28  ;;  %v9023_v28 = vand.u32 4294901760, %v9022_v26  ;;  %v9436_v38 = vsel %vm256_vm2, %v9428_v32, 0  ;;  %v9427_v42 = vmul.f32 %v10643_v10, %v9425_v35 }
 0x4f7   : > { %v9438_v43 = vand.u32 4294901760, %v9436_v38  ;;  %v9506_v39 = vsub.f32 %v9430_v14, %v9505_v47 }
 0x4f8   : > { %v9024_v30 = vsub.f32 %v9022_v26, %v9023_v28  ;;  %v9433_v45 = vsel %vm256_vm2, %v9427_v42, 0 }
 0x4f9   : > { %v9517_v9 = vsub.f32 %v9436_v38, %v9438_v43  ;;  %v9440_v51 = vand.u32 4294901760, %v9433_v45  ;;  %v9507_v54 = vand.u32 4294901760, %v9506_v39 }
 0x4fb   : > { %v9518_v52 = vand.u32 4294901760, %v9517_v9  ;;  %v9523_v10 = vsub.f32 %v9433_v45, %v9440_v51 }
 0x4fc   : > { %8371 = vmatmul.mubr.f32.vlgmr.msra.gmra.mrb[0].mxu1 %v8053_v44 }
 0x4fd   : > { %8380 = vmatpush1.msra.mxu1 %v7988_v37  ;;  %8443 = vmatprep.mubr.f32.mxu1 %v10274_v2  ;;  %v9025_v37 = vand.u32 4294901760, %v9024_v30  ;;  %v9519_v53 = vsub.f32 %v9517_v9, %v9518_v52  ;;  %v9524_v55 = vand.u32 4294901760, %v9523_v10 }
 0x4fe   : > { %8471 = vmatprep.subr.mxu1 %v8470_v57 }
 0x4ff   : > { %v9520_v56 = vand.u32 4294901760, %v9519_v53  ;;  %v9525_v8 = vsub.f32 %v9523_v10, %v9524_v55 }
 0x504   : > { %8445 = vmatmul.mubr.f32.vlgmr.msra.gmra.mrb[0].mxu1 %v8053_v44  ;;  %v9041_v44 = vsub.f32 %v9039_v34, %v9040_v36 }
 0x505   : > { %8473 = vmatpush1.msra.mxu1 %v8472_v41  ;;  %8536 = vmatprep.mubr.f32.mxu1 %v10274_v2 }
 0x506   : > { %8553 = vmatprep.subr.mxu1 %v8552_v6  ;;  %v9042_v1 = vand.u32 4294901760, %v9041_v44 }
 0x50c   : > { %8542 = vmatmul.mubr.f32.vlgmr.msra.gmra.mrb[0].mxu1 %v8541_v11 }
 0x50d   : > { %8559 = vmatpush1.msra.mxu1 %v8558_v12  ;;  %8622 = vmatprep.mubr.f32.mxu1 %v10274_v2 }
 0x50e   : > { %8632 = vmatprep.subr.mxu1 %v8549_v59  ;;  %v9526_v59 = vand.u32 4294901760, %v9525_v8 }
 0x514   : > { %8624 = vmatmul.mubr.f32.vlgmr.msra.gmra.mrb[0].mxu1 %v8537_v60 }
 0x515   : > { %8635 = vmatpush1.msra.mxu1 %v8555_v5  ;;  %8698 = vmatprep.mubr.f32.mxu1 %v10274_v2 }
 0x516   : > { %8708 = vmatprep.subr.mxu1 %v8470_v57 }
 0x51c   : > { %8701 = vmatmul.mubr.f32.vlgmr.msra.gmra.mrb[0].mxu1 %v8538_v62  ;;  %v10265_v62 = vld [vmem:[%s10326_s20] sm:$0xff] }
 0x51d   : > { %8710 = vmatpush1.msra.mxu1 %v8472_v41  ;;  %8773 = vmatprep.mubr.f32.mxu1 %v10274_v2 }
 0x51e   : > { %8786 = vmatprep.subr.mxu1 %v8550_v61 }
 0x524   : > { %8777 = vmatmul.mubr.f32.vlgmr.msra.gmra.mrb[0].mxu1 %v8539_v0 }
 0x525   : > { %8790 = vmatpush1.msra.mxu1 %v8556_v4  ;;  %8853 = vmatprep.mubr.f32.mxu1 %v10274_v2 }
 0x526   : > { %8862 = vmatprep.subr.mxu1 %v8470_v57  ;;  %v9508_v57 = vsub.f32 %v9506_v39, %v9507_v54 }
 0x528   : > { %v9509_v58 = vand.u32 4294901760, %v9508_v57 }
 0x52c   : > { %8855 = vmatmul.mubr.f32.vlgmr.msra.gmra.mrb[0].mxu1 %v8537_v60 }
 0x52d   : > { %8864 = vmatpush1.msra.mxu1 %v8472_v41  ;;  %8927 = vmatprep.mubr.f32.mxu1 %v10274_v2 }
 0x52e   : > { %8955 = vmatprep.subr.mxu1 %v8954_v13 }
 0x534   : > { %8929 = vmatmul.mubr.f32.vlgmr.msra.gmra.mrb[0].mxu1 %v8537_v60 }
 0x535   : > { %8957 = vmatpush1.msra.mxu1 %v8956_v24  ;;  %9020 = vmatprep.mubr.f32.mxu1 %v10274_v2 }
 0x536   : > { %9037 = vmatprep.subr.mxu1 %v9036_v29 }
 0x53c   : > { %9026 = vmatmul.mubr.f32.vlgmr.msra.gmra.mrb[0].mxu1 %v9025_v37 }
 0x53d   : > { %9043 = vmatpush1.msra.mxu1 %v9042_v1  ;;  %9106 = vmatprep.mubr.f32.mxu1 %v10274_v2 }
 0x53e   : > { %9116 = vmatprep.subr.mxu1 %v9033_v23 }
 0x544   : > { %9108 = vmatmul.mubr.f32.vlgmr.msra.gmra.mrb[0].mxu1 %v9021_v3 }
 0x545   : > { %9119 = vmatpush1.msra.mxu1 %v9039_v34  ;;  %9182 = vmatprep.mubr.f32.mxu1 %v10274_v2 }
 0x546   : > { %9192 = vmatprep.subr.mxu1 %v8954_v13 }
 0x54c   : > { %9185 = vmatmul.mubr.f32.vlgmr.msra.gmra.mrb[0].mxu1 %v9022_v26 }
 0x54d   : > { %9194 = vmatpush1.msra.mxu1 %v8956_v24  ;;  %9257 = vmatprep.mubr.f32.mxu1 %v10274_v2 }
 0x54e   : > { %9270 = vmatprep.subr.mxu1 %v9034_v25 }
 0x554   : > { %9261 = vmatmul.mubr.f32.vlgmr.msra.gmra.mrb[0].mxu1 %v9023_v28 }
 0x555   : > { %9274 = vmatpush1.msra.mxu1 %v9040_v36  ;;  %9337 = vmatprep.mubr.f32.mxu1 %v10274_v2 }
 0x556   : > { %9346 = vmatprep.subr.mxu1 %v8954_v13 }
 0x55c   : > { %9339 = vmatmul.mubr.f32.vlgmr.msra.gmra.mrb[0].mxu1 %v9021_v3 }
 0x55d   : > { %9348 = vmatpush1.msra.mxu1 %v8956_v24  ;;  %9411 = vmatprep.mubr.f32.mxu1 %v10274_v2 }
 0x55e   : > { %9439 = vmatprep.subr.mxu1 %v9438_v43 }
 0x564   : > { %9413 = vmatmul.mubr.f32.vlgmr.msra.gmra.mrb[0].mxu1 %v9021_v3 }
 0x565   : > { %9441 = vmatpush1.msra.mxu1 %v9440_v51  ;;  %9504 = vmatprep.mubr.f32.mxu1 %v10274_v2 }
 0x566   : > { %9521 = vmatprep.subr.mxu1 %v9520_v56 }
 0x56c   : > { %9510 = vmatmul.mubr.f32.vlgmr.msra.gmra.mrb[0].mxu1 %v9509_v58 }
 0x56d   : > { %9527 = vmatpush1.msra.mxu1 %v9526_v59  ;;  %9590 = vmatprep.mubr.f32.mxu1 %v10274_v2 }
 0x56e   : > { %9600 = vmatprep.subr.mxu1 %v9517_v9 }
 0x574   : > { %9592 = vmatmul.mubr.f32.vlgmr.msra.gmra.mrb[0].mxu1 %v9505_v47 }
 0x575   : > { %9603 = vmatpush1.msra.mxu1 %v9523_v10  ;;  %9666 = vmatprep.mubr.f32.mxu1 %v10274_v2 }
 0x576   : > { %9676 = vmatprep.subr.mxu1 %v9438_v43 }
 0x57c   : > { %9669 = vmatmul.mubr.f32.vlgmr.msra.gmra.mrb[0].mxu1 %v9506_v39 }
 0x57d   : > { %9678 = vmatpush1.msra.mxu1 %v9440_v51  ;;  %9741 = vmatprep.mubr.f32.mxu1 %v10274_v2 }
 0x57e   : > { %9754 = vmatprep.subr.mxu1 %v9518_v52 }
 0x584   : > { %9745 = vmatmul.mubr.f32.vlgmr.msra.gmra.mrb[0].mxu1 %v9507_v54 }
 0x585   : > { %9758 = vmatpush1.msra.mxu1 %v9524_v55  ;;  %9821 = vmatprep.mubr.f32.mxu1 %v10274_v2 }
 0x586   : > { %9830 = vmatprep.subr.mxu1 %v9438_v43 }
 0x58c   : > { %9823 = vmatmul.mubr.f32.vlgmr.msra.gmra.mrb[0].mxu1 %v9505_v47 }
 0x58d   : > { %9832 = vmatpush1.msra.mxu1 %v9440_v51  ;;  %9895 = vmatprep.mubr.f32.mxu1 %v10274_v2 }
 0x594   : > { %9897 = vmatmul.mubr.f32.vlgmr.msra.gmra.mrb[0].mxu1 %v9505_v47 }
 0x667   : > { %v9898_v60 = vpop.f32.mrb[0].mxu1 }
 0x668   : > { %v9900_v41 = vpop.f32.mrb[1].mxu1 }
 0x669   : > { %v9907_v61 = vcombine.low %v9898_v60, %v9900_v41 }
 0x66b   : > { %v9909_v5 = vadd.f32 %v10265_v62, %v9907_v61 }
 0x66d   : > { %9910 = vst [vmem:[%s197_s8] sm:$0xff] %v9909_v5 }
 0x66e PF: > { %s14_s15 = sadd.s32 1, %s10272_s15  }
 0x66f   : > { %p11_p4 = scmp.ge.s32.totalorder %s14_s15, 4  }
 0x671   :  { %13 = sbr.rel (!%p11_p4) target bundleno = 1 (0x1), region = 73 }

</bundles_post_ra>
